<compile_context>
chip_gen: v7x
topology: tpu7x:2x2x1
jax: 0.10.0
libtpu: 0.0.40
codegen_flags: <defaults>
</compile_context>

<pallas_src>
import functools
import math

import jax
import jax.numpy as jnp
from jax.experimental import pallas as pl
from jax.experimental.pallas import tpu as pltpu


def _round_up(x: int, m: int) -> int:
    return (x + m - 1) // m * m


def time_embedding_kernel(t_ref, freq_ref, phase_ref, w1_ref, b1_ref, w2_ref, b2_ref,
                          o_ref, *, block_rows):
    # Slice this grid step's rows out of the resident t vector (no per-step t DMA).
    row0 = pl.multiple_of(pl.program_id(0) * block_rows, block_rows)
    t = t_ref[pl.ds(row0, block_rows), :]                # (TB, 1)      f32

    # Sinusoidal embedding without any cross-lane shuffle:
    #   lanes [0, half)    -> sin(t * f_i)            (phase = 0)
    #   lanes [half, dim)  -> sin(t * f_i + pi/2)     == cos(t * f_i)
    #   padded lanes       -> sin(0 + 0) = 0          (hit zero-padded weight rows)
    emb = jnp.sin(t * freq_ref[...] + phase_ref[...])    # (TB, dim_e)  f32

    # Linear(dim, 4*dim) -> SiLU.  bf16 operands on the MXU, f32 accumulation.
    h = jnp.dot(emb.astype(w1_ref.dtype), w1_ref[...],
                preferred_element_type=jnp.float32)
    h = h + b1_ref[...]
    # SiLU via EUP exp + approx EUP reciprocal (keeps both off the VALU path).
    h = h * pl.reciprocal(1.0 + jnp.exp(-h), approx=True)

    # Linear(4*dim, dim), bf16 MXU + f32 accumulation.
    out = jnp.dot(h.astype(w2_ref.dtype), w2_ref[...],
                  preferred_element_type=jnp.float32)
    out = out + b2_ref[...]
    o_ref[...] = out.astype(o_ref.dtype)


def prepare_time_embedding_params(freq, w1, b1, w2, b2,
                                  weight_dtype=jnp.bfloat16, lane_align=256):
    """Layout plumbing done once, outside the hot path.

    freq: (1, half)  w1: (dim, 4*dim)  b1: (1, 4*dim)  w2: (4*dim, dim)  b2: (1, dim)
    Returns tiled/zero-padded params (mathematically exact) and the true dim.
    lane_align=256 keeps v6e/v7x MXU passes full-width; use 128 on v5e if desired.
    """
    half = freq.shape[1]
    dim = 2 * half
    hid = 4 * dim
    dim_e = _round_up(dim, lane_align)   # embedding / first-contraction lanes
    hid_p = _round_up(hid, lane_align)   # hidden lanes
    dim_o = _round_up(dim, lane_align)   # output lanes (lane-dense store)

    freq = freq.astype(jnp.float32)
    freq_tiled = jnp.concatenate([freq, freq], axis=1)                       # (1, dim)
    phase = jnp.concatenate([jnp.zeros((1, half), jnp.float32),
                             jnp.full((1, half), 0.5 * jnp.pi, jnp.float32)], axis=1)
    freq_tiled = jnp.pad(freq_tiled, ((0, 0), (0, dim_e - dim)))             # (1, dim_e)
    phase = jnp.pad(phase, ((0, 0), (0, dim_e - dim)))

    w1p = jnp.pad(w1.astype(weight_dtype), ((0, dim_e - dim), (0, hid_p - hid)))
    b1p = jnp.pad(b1.astype(jnp.float32), ((0, 0), (0, hid_p - hid)))
    w2p = jnp.pad(w2.astype(weight_dtype), ((0, hid_p - hid), (0, dim_o - dim)))
    b2p = jnp.pad(b2.astype(jnp.float32), ((0, 0), (0, dim_o - dim)))
    return (freq_tiled, phase, w1p, b1p, w2p, b2p), dim


def _physical_vmem_bytes() -> int:
    try:
        return int(pltpu.get_tpu_info().vmem_capacity_bytes)
    except Exception:
        return 64 * 1024 * 1024   # conservative default (v7x per-TC size)


def _resident_spec(shape, single_buffered):
    """BlockSpec for a grid-invariant operand; single-buffer it when supported."""
    index_map = lambda i: (0, 0)
    if single_buffered and hasattr(pl, "Buffered"):
        try:
            return pl.BlockSpec(shape, index_map, pipeline_mode=pl.Buffered(1))
        except TypeError:
            pass
    return pl.BlockSpec(shape, index_map)


def time_embedding(t, prepared, dim, *, block_b=512, out_dtype=jnp.float32):
    freq_tiled, phase, w1p, b1p, w2p, b2p = prepared
    dim_e = freq_tiled.shape[1]
    hid_p = w1p.shape[1]
    dim_o = w2p.shape[1]
    w_itemsize = jnp.dtype(w1p.dtype).itemsize
    out_itemsize = jnp.dtype(out_dtype).itemsize

    B = t.shape[0]
    B_p = _round_up(B, 8)
    TB = min(B_p, _round_up(block_b, 8))
    # Guarantee >=2 parallel tiles when the batch allows it, so the 'parallel' grid
    # axis can shard across both TensorCores on v7x.
    if B_p // TB < 2 and B_p > 8:
        TB = _round_up(-(-B_p // 2), 8)
    B_p = _round_up(B_p, TB)
    nb = B_p // TB

    t2 = jnp.pad(t.astype(jnp.float32).reshape(B, 1), ((0, B_p - B), (0, 0)))

    # Advisory cost estimate so XLA schedules around the custom call sensibly.
    flops = (2 * B_p * dim_e * hid_p + 2 * B_p * hid_p * dim_o
             + 6 * B_p * (dim_e + hid_p + dim_o))
    transcendentals = B_p * (dim_e + 2 * hid_p)
    bytes_accessed = ((t2.size + freq_tiled.size + phase.size + b1p.size + b2p.size) * 4
                      + (w1p.size + w2p.size) * w_itemsize
                      + B_p * dim_o * out_itemsize)

    # VMEM budget: single-buffered resident weights/consts + resident t
    # + double-buffered output tile + live f32 activations.
    vmem_bytes = ((dim_e * hid_p + hid_p * dim_o) * w_itemsize
                  + (2 * dim_e + hid_p + dim_o + B_p) * 4
                  + 2 * TB * dim_o * out_itemsize
                  + TB * (dim_e + 2 * hid_p + dim_o) * 4)
    vmem_cap = max(_physical_vmem_bytes() - 16 * 1024 * 1024, 32 * 1024 * 1024)
    vmem_limit = int(min(max(int(1.5 * vmem_bytes) + (8 << 20), 32 << 20), vmem_cap))

    args = (t2, freq_tiled, phase, w1p, b1p, w2p, b2p)

    def build(single_buffered):
        in_specs = [
            _resident_spec((B_p, 1), single_buffered),        # t     (resident, sliced in-kernel)
            _resident_spec((1, dim_e), single_buffered),      # freq
            _resident_spec((1, dim_e), single_buffered),      # phase
            _resident_spec((dim_e, hid_p), single_buffered),  # w1
            _resident_spec((1, hid_p), single_buffered),      # b1
            _resident_spec((hid_p, dim_o), single_buffered),  # w2
            _resident_spec((1, dim_o), single_buffered),      # b2
        ]
        return pl.pallas_call(
            functools.partial(time_embedding_kernel, block_rows=TB),
            out_shape=jax.ShapeDtypeStruct((B_p, dim_o), out_dtype),
            grid=(nb,),
            in_specs=in_specs,
            out_specs=pl.BlockSpec((TB, dim_o), lambda i: (i, 0)),
            compiler_params=pltpu.CompilerParams(
                dimension_semantics=("parallel",),
                vmem_limit_bytes=vmem_limit,
            ),
            cost_estimate=pl.CostEstimate(
                flops=int(flops),
                transcendentals=int(transcendentals),
                bytes_accessed=int(bytes_accessed),
            ),
        )

    try:
        out_padded = build(True)(*args)
    except Exception:
        # Compat fallback: older Pallas without BlockSpec pipeline_mode / Buffered(1).
        out_padded = build(False)(*args)

    return out_padded[:B, :dim]


def make_params(dim: int, key):
    """Deterministic parameter init (PyTorch nn.Linear default: U(-1/sqrt(in), 1/sqrt(in)))."""
    half = dim // 2
    hid = 4 * dim
    scale = math.log(10000.0) / (half - 1)
    freq = jnp.exp(jnp.arange(half, dtype=jnp.float32) * -scale).reshape(1, half)

    k1, k2, k3, k4 = jax.random.split(key, 4)
    bnd1 = 1.0 / math.sqrt(dim)
    bnd2 = 1.0 / math.sqrt(hid)
    w1 = jax.random.uniform(k1, (dim, hid), jnp.float32, -bnd1, bnd1)   # (in, out) == torch W.T
    b1 = jax.random.uniform(k2, (1, hid), jnp.float32, -bnd1, bnd1)
    w2 = jax.random.uniform(k3, (hid, dim), jnp.float32, -bnd2, bnd2)   # (in, out) == torch W.T
    b2 = jax.random.uniform(k4, (1, dim), jnp.float32, -bnd2, bnd2)
    return freq, w1, b1, w2, b2


def reference(t, freq, w1, b1, w2, b2):
    emb = t[:, None] * freq
    emb = jnp.concatenate([jnp.sin(emb), jnp.cos(emb)], axis=-1)
    h = emb @ w1 + b1
    h = h * jax.nn.sigmoid(h)
    return h @ w2 + b2


if __name__ == "__main__":
    B, dim = 8, 32
    key = jax.random.PRNGKey(0)
    kp, kt = jax.random.split(key)
    freq, w1, b1, w2, b2 = make_params(dim, kp)
    t = jax.random.uniform(kt, (B,), jnp.float32)            # times in [0, 1)

    # bf16 weights by default (MXU-native, halves weight DMA/VMEM).  Pass
    # weight_dtype=jnp.float32 to match the PyTorch module to ~1e-5 instead.
    prepared, dim_true = prepare_time_embedding_params(freq, w1, b1, w2, b2)

    out = time_embedding(t, prepared, dim_true)
    out = jax.block_until_ready(out)

    ref = reference(t, freq, w1, b1, w2, b2)
    assert out.shape == (B, dim)
    # bf16 matmuls + approx EUP reciprocal: compare at bf16-appropriate tolerance.
    assert jnp.allclose(out, ref, atol=4e-2, rtol=4e-2), "mismatch vs JAX reference"
    print("KERNEL_OK")
</pallas_src>

<mosaic_0001>
module attributes {stable_mosaic.version = 11 : i64} {
  func.func @time_embedding_kernel(%arg0: i32, %arg1: memref<8x1xf32, #tpu.memory_space<vmem>>, %arg2: memref<1x256xf32, #tpu.memory_space<vmem>>, %arg3: memref<1x256xf32, #tpu.memory_space<vmem>>, %arg4: memref<256x256xbf16, #tpu.memory_space<vmem>>, %arg5: memref<1x256xf32, #tpu.memory_space<vmem>>, %arg6: memref<256x256xbf16, #tpu.memory_space<vmem>>, %arg7: memref<1x256xf32, #tpu.memory_space<vmem>>, %arg8: memref<8x256xf32, #tpu.memory_space<vmem>>) attributes {dimension_semantics = [#tpu.dimension_semantics<parallel>], iteration_bounds = array<i64: 1>, scalar_prefetch = 0 : i64, scratch_operands = 0 : i64, tpu.core_type = #tpu.core_type<tc>, window_params = [{pipeline_mode = #tpu.pipeline_mode<synchronous>, transform_indices = @transform_0, window_bounds = array<i64: 8, 1>}, {pipeline_mode = #tpu.pipeline_mode<synchronous>, transform_indices = @transform_1, window_bounds = array<i64: 1, 256>}, {pipeline_mode = #tpu.pipeline_mode<synchronous>, transform_indices = @transform_2, window_bounds = array<i64: 1, 256>}, {pipeline_mode = #tpu.pipeline_mode<synchronous>, transform_indices = @transform_3, window_bounds = array<i64: 256, 256>}, {pipeline_mode = #tpu.pipeline_mode<synchronous>, transform_indices = @transform_4, window_bounds = array<i64: 1, 256>}, {pipeline_mode = #tpu.pipeline_mode<synchronous>, transform_indices = @transform_5, window_bounds = array<i64: 256, 256>}, {pipeline_mode = #tpu.pipeline_mode<synchronous>, transform_indices = @transform_6, window_bounds = array<i64: 1, 256>}, {transform_indices = @transform_7, window_bounds = array<i64: 8, 256>}]} {
    %c8_i32 = arith.constant 8 : i32
    %0 = arith.muli %arg0, %c8_i32 : i32
    %1 = tpu.assume_multiple %0, 8 : i32
    %2 = arith.index_cast %1 : i32 to index
    %c0 = arith.constant 0 : index
    %3 = vector.load %arg1[%2, %c0] : memref<8x1xf32, #tpu.memory_space<vmem>>, vector<8x1xf32>
    %c0_0 = arith.constant 0 : index
    %c0_1 = arith.constant 0 : index
    %4 = vector.load %arg2[%c0_0, %c0_1] : memref<1x256xf32, #tpu.memory_space<vmem>>, vector<1x256xf32>
    %5 = vector.broadcast %3 : vector<8x1xf32> to vector<8x256xf32>
    %6 = vector.broadcast %4 : vector<1x256xf32> to vector<8x256xf32>
    %7 = arith.mulf %5, %6 : vector<8x256xf32>
    %c0_2 = arith.constant 0 : index
    %c0_3 = arith.constant 0 : index
    %8 = vector.load %arg3[%c0_2, %c0_3] : memref<1x256xf32, #tpu.memory_space<vmem>>, vector<1x256xf32>
    %9 = vector.broadcast %8 : vector<1x256xf32> to vector<8x256xf32>
    %10 = arith.addf %7, %9 : vector<8x256xf32>
    %11 = math.sin %10 : vector<8x256xf32>
    %12 = arith.truncf %11 : vector<8x256xf32> to vector<8x256xbf16>
    %c0_4 = arith.constant 0 : index
    %c0_5 = arith.constant 0 : index
    %13 = vector.load %arg4[%c0_4, %c0_5] : memref<256x256xbf16, #tpu.memory_space<vmem>>, vector<256x256xbf16>
    %cst = arith.constant dense<0.000000e+00> : vector<8x256xf32>
    %14 = tpu.matmul %12, %13, %cst {dimension_numbers = #tpu.dot_dimension_numbers<[1], [0], [0], [1], [0, 0, 1, 1], [], []>} : vector<8x256xbf16>, vector<256x256xbf16>, vector<8x256xf32> -> vector<8x256xf32>
    %c0_6 = arith.constant 0 : index
    %c0_7 = arith.constant 0 : index
    %15 = vector.load %arg5[%c0_6, %c0_7] : memref<1x256xf32, #tpu.memory_space<vmem>>, vector<1x256xf32>
    %16 = vector.broadcast %15 : vector<1x256xf32> to vector<8x256xf32>
    %17 = arith.addf %14, %16 : vector<8x256xf32>
    %cst_8 = arith.constant 0.000000e+00 : f32
    %18 = vector.broadcast %cst_8 : f32 to vector<8x256xf32>
    %19 = arith.subf %18, %17 : vector<8x256xf32>
    %20 = math.exp %19 : vector<8x256xf32>
    %cst_9 = arith.constant 1.000000e+00 : f32
    %21 = vector.broadcast %cst_9 : f32 to vector<8x256xf32>
    %22 = arith.addf %21, %20 : vector<8x256xf32>
    %23 = tpu.reciprocal %22 {approx = true} : vector<8x256xf32> -> vector<8x256xf32>
    %24 = arith.mulf %17, %23 : vector<8x256xf32>
    %25 = arith.truncf %24 : vector<8x256xf32> to vector<8x256xbf16>
    %c0_10 = arith.constant 0 : index
    %c0_11 = arith.constant 0 : index
    %26 = vector.load %arg6[%c0_10, %c0_11] : memref<256x256xbf16, #tpu.memory_space<vmem>>, vector<256x256xbf16>
    %cst_12 = arith.constant dense<0.000000e+00> : vector<8x256xf32>
    %27 = tpu.matmul %25, %26, %cst_12 {dimension_numbers = #tpu.dot_dimension_numbers<[1], [0], [0], [1], [0, 0, 1, 1], [], []>} : vector<8x256xbf16>, vector<256x256xbf16>, vector<8x256xf32> -> vector<8x256xf32>
    %c0_13 = arith.constant 0 : index
    %c0_14 = arith.constant 0 : index
    %28 = vector.load %arg7[%c0_13, %c0_14] : memref<1x256xf32, #tpu.memory_space<vmem>>, vector<1x256xf32>
    %29 = vector.broadcast %28 : vector<1x256xf32> to vector<8x256xf32>
    %30 = arith.addf %27, %29 : vector<8x256xf32>
    %c0_15 = arith.constant 0 : index
    %c0_16 = arith.constant 0 : index
    %31 = vector.load %arg8[%c0_15, %c0_16] : memref<8x256xf32, #tpu.memory_space<vmem>>, vector<8x256xf32>
    tpu.vector_store %arg8[%c0_15, %c0_16], %30 {strides = array<i32>} : memref<8x256xf32, #tpu.memory_space<vmem>>, vector<8x256xf32>,
    return
  }
  func.func @transform_0(%arg0: i32) -> (i32, i32) {
    %c0_i32 = arith.constant 0 : i32
    %c0_i32_0 = arith.constant 0 : i32
    %c0_i32_1 = arith.constant 0 : i32
    return %c0_i32, %c0_i32_0 : i32, i32
  }
  func.func @transform_1(%arg0: i32) -> (i32, i32) {
    %c0_i32 = arith.constant 0 : i32
    %c0_i32_0 = arith.constant 0 : i32
    %c0_i32_1 = arith.constant 0 : i32
    return %c0_i32, %c0_i32_0 : i32, i32
  }
  func.func @transform_2(%arg0: i32) -> (i32, i32) {
    %c0_i32 = arith.constant 0 : i32
    %c0_i32_0 = arith.constant 0 : i32
    %c0_i32_1 = arith.constant 0 : i32
    return %c0_i32, %c0_i32_0 : i32, i32
  }
  func.func @transform_3(%arg0: i32) -> (i32, i32) {
    %c0_i32 = arith.constant 0 : i32
    %c0_i32_0 = arith.constant 0 : i32
    %c0_i32_1 = arith.constant 0 : i32
    return %c0_i32, %c0_i32_0 : i32, i32
  }
  func.func @transform_4(%arg0: i32) -> (i32, i32) {
    %c0_i32 = arith.constant 0 : i32
    %c0_i32_0 = arith.constant 0 : i32
    %c0_i32_1 = arith.constant 0 : i32
    return %c0_i32, %c0_i32_0 : i32, i32
  }
  func.func @transform_5(%arg0: i32) -> (i32, i32) {
    %c0_i32 = arith.constant 0 : i32
    %c0_i32_0 = arith.constant 0 : i32
    %c0_i32_1 = arith.constant 0 : i32
    return %c0_i32, %c0_i32_0 : i32, i32
  }
  func.func @transform_6(%arg0: i32) -> (i32, i32) {
    %c0_i32 = arith.constant 0 : i32
    %c0_i32_0 = arith.constant 0 : i32
    %c0_i32_1 = arith.constant 0 : i32
    return %c0_i32, %c0_i32_0 : i32, i32
  }
  func.func @transform_7(%arg0: i32) -> (i32, i32) {
    %c0_i32 = arith.constant 0 : i32
    %c0_i32_0 = arith.constant 0 : i32
    return %arg0, %c0_i32 : i32, i32
  }
}

module attributes {stable_mosaic.version = 11 : i64} {
  func.func @time_embedding_kernel(%arg0: i32, %arg1: memref<8x1xf32, #tpu.memory_space<vmem>>, %arg2: memref<1x256xf32, #tpu.memory_space<vmem>>, %arg3: memref<1x256xf32, #tpu.memory_space<vmem>>, %arg4: memref<256x256xbf16, #tpu.memory_space<vmem>>, %arg5: memref<1x256xf32, #tpu.memory_space<vmem>>, %arg6: memref<256x256xbf16, #tpu.memory_space<vmem>>, %arg7: memref<1x256xf32, #tpu.memory_space<vmem>>, %arg8: memref<8x256xf32, #tpu.memory_space<vmem>>) attributes {dimension_semantics = [#tpu.dimension_semantics<parallel>], iteration_bounds = array<i64: 1>, scalar_prefetch = 0 : i64, scratch_operands = 0 : i64, tpu.core_type = #tpu.core_type<tc>, window_params = [{pipeline_mode = #tpu.pipeline_mode<synchronous>, transform_indices = @transform_0, window_bounds = array<i64: 8, 1>}, {pipeline_mode = #tpu.pipeline_mode<synchronous>, transform_indices = @transform_1, window_bounds = array<i64: 1, 256>}, {pipeline_mode = #tpu.pipeline_mode<synchronous>, transform_indices = @transform_2, window_bounds = array<i64: 1, 256>}, {pipeline_mode = #tpu.pipeline_mode<synchronous>, transform_indices = @transform_3, window_bounds = array<i64: 256, 256>}, {pipeline_mode = #tpu.pipeline_mode<synchronous>, transform_indices = @transform_4, window_bounds = array<i64: 1, 256>}, {pipeline_mode = #tpu.pipeline_mode<synchronous>, transform_indices = @transform_5, window_bounds = array<i64: 256, 256>}, {pipeline_mode = #tpu.pipeline_mode<synchronous>, transform_indices = @transform_6, window_bounds = array<i64: 1, 256>}, {transform_indices = @transform_7, window_bounds = array<i64: 8, 256>}]} {
    %c8_i32 = arith.constant 8 : i32
    %0 = arith.muli %arg0, %c8_i32 : i32
    %1 = tpu.assume_multiple %0, 8 : i32
    %2 = arith.index_cast %1 : i32 to index
    %c0 = arith.constant 0 : index
    %3 = vector.load %arg1[%2, %c0] : memref<8x1xf32, #tpu.memory_space<vmem>>, vector<8x1xf32>
    %c0_0 = arith.constant 0 : index
    %c0_1 = arith.constant 0 : index
    %4 = vector.load %arg2[%c0_0, %c0_1] : memref<1x256xf32, #tpu.memory_space<vmem>>, vector<1x256xf32>
    %5 = vector.broadcast %3 : vector<8x1xf32> to vector<8x256xf32>
    %6 = vector.broadcast %4 : vector<1x256xf32> to vector<8x256xf32>
    %7 = arith.mulf %5, %6 : vector<8x256xf32>
    %c0_2 = arith.constant 0 : index
    %c0_3 = arith.constant 0 : index
    %8 = vector.load %arg3[%c0_2, %c0_3] : memref<1x256xf32, #tpu.memory_space<vmem>>, vector<1x256xf32>
    %9 = vector.broadcast %8 : vector<1x256xf32> to vector<8x256xf32>
    %10 = arith.addf %7, %9 : vector<8x256xf32>
    %11 = math.sin %10 : vector<8x256xf32>
    %12 = arith.truncf %11 : vector<8x256xf32> to vector<8x256xbf16>
    %c0_4 = arith.constant 0 : index
    %c0_5 = arith.constant 0 : index
    %13 = vector.load %arg4[%c0_4, %c0_5] : memref<256x256xbf16, #tpu.memory_space<vmem>>, vector<256x256xbf16>
    %cst = arith.constant dense<0.000000e+00> : vector<8x256xf32>
    %14 = tpu.matmul %12, %13, %cst {dimension_numbers = #tpu.dot_dimension_numbers<[1], [0], [0], [1], [0, 0, 1, 1], [], []>} : vector<8x256xbf16>, vector<256x256xbf16>, vector<8x256xf32> -> vector<8x256xf32>
    %c0_6 = arith.constant 0 : index
    %c0_7 = arith.constant 0 : index
    %15 = vector.load %arg5[%c0_6, %c0_7] : memref<1x256xf32, #tpu.memory_space<vmem>>, vector<1x256xf32>
    %16 = vector.broadcast %15 : vector<1x256xf32> to vector<8x256xf32>
    %17 = arith.addf %14, %16 : vector<8x256xf32>
    %cst_8 = arith.constant 0.000000e+00 : f32
    %18 = vector.broadcast %cst_8 : f32 to vector<8x256xf32>
    %19 = arith.subf %18, %17 : vector<8x256xf32>
    %20 = math.exp %19 : vector<8x256xf32>
    %cst_9 = arith.constant 1.000000e+00 : f32
    %21 = vector.broadcast %cst_9 : f32 to vector<8x256xf32>
    %22 = arith.addf %21, %20 : vector<8x256xf32>
    %23 = tpu.reciprocal %22 {approx = true} : vector<8x256xf32> -> vector<8x256xf32>
    %24 = arith.mulf %17, %23 : vector<8x256xf32>
    %25 = arith.truncf %24 : vector<8x256xf32> to vector<8x256xbf16>
    %c0_10 = arith.constant 0 : index
    %c0_11 = arith.constant 0 : index
    %26 = vector.load %arg6[%c0_10, %c0_11] : memref<256x256xbf16, #tpu.memory_space<vmem>>, vector<256x256xbf16>
    %cst_12 = arith.constant dense<0.000000e+00> : vector<8x256xf32>
    %27 = tpu.matmul %25, %26, %cst_12 {dimension_numbers = #tpu.dot_dimension_numbers<[1], [0], [0], [1], [0, 0, 1, 1], [], []>} : vector<8x256xbf16>, vector<256x256xbf16>, vector<8x256xf32> -> vector<8x256xf32>
    %c0_13 = arith.constant 0 : index
    %c0_14 = arith.constant 0 : index
    %28 = vector.load %arg7[%c0_13, %c0_14] : memref<1x256xf32, #tpu.memory_space<vmem>>, vector<1x256xf32>
    %29 = vector.broadcast %28 : vector<1x256xf32> to vector<8x256xf32>
    %30 = arith.addf %27, %29 : vector<8x256xf32>
    %c0_15 = arith.constant 0 : index
    %c0_16 = arith.constant 0 : index
    %31 = vector.load %arg8[%c0_15, %c0_16] : memref<8x256xf32, #tpu.memory_space<vmem>>, vector<8x256xf32>
    tpu.vector_store %arg8[%c0_15, %c0_16], %30 {strides = array<i32>} : memref<8x256xf32, #tpu.memory_space<vmem>>, vector<8x256xf32>,
    return
  }
  func.func @transform_0(%arg0: i32) -> (i32, i32) {
    %c0_i32 = arith.constant 0 : i32
    %c0_i32_0 = arith.constant 0 : i32
    %c0_i32_1 = arith.constant 0 : i32
    return %c0_i32, %c0_i32_0 : i32, i32
  }
  func.func @transform_1(%arg0: i32) -> (i32, i32) {
    %c0_i32 = arith.constant 0 : i32
    %c0_i32_0 = arith.constant 0 : i32
    %c0_i32_1 = arith.constant 0 : i32
    return %c0_i32, %c0_i32_0 : i32, i32
  }
  func.func @transform_2(%arg0: i32) -> (i32, i32) {
    %c0_i32 = arith.constant 0 : i32
    %c0_i32_0 = arith.constant 0 : i32
    %c0_i32_1 = arith.constant 0 : i32
    return %c0_i32, %c0_i32_0 : i32, i32
  }
  func.func @transform_3(%arg0: i32) -> (i32, i32) {
    %c0_i32 = arith.constant 0 : i32
    %c0_i32_0 = arith.constant 0 : i32
    %c0_i32_1 = arith.constant 0 : i32
    return %c0_i32, %c0_i32_0 : i32, i32
  }
  func.func @transform_4(%arg0: i32) -> (i32, i32) {
    %c0_i32 = arith.constant 0 : i32
    %c0_i32_0 = arith.constant 0 : i32
    %c0_i32_1 = arith.constant 0 : i32
    return %c0_i32, %c0_i32_0 : i32, i32
  }
  func.func @transform_5(%arg0: i32) -> (i32, i32) {
    %c0_i32 = arith.constant 0 : i32
    %c0_i32_0 = arith.constant 0 : i32
    %c0_i32_1 = arith.constant 0 : i32
    return %c0_i32, %c0_i32_0 : i32, i32
  }
  func.func @transform_6(%arg0: i32) -> (i32, i32) {
    %c0_i32 = arith.constant 0 : i32
    %c0_i32_0 = arith.constant 0 : i32
    %c0_i32_1 = arith.constant 0 : i32
    return %c0_i32, %c0_i32_0 : i32, i32
  }
  func.func @transform_7(%arg0: i32) -> (i32, i32) {
    %c0_i32 = arith.constant 0 : i32
    %c0_i32_0 = arith.constant 0 : i32
    return %arg0, %c0_i32 : i32, i32
  }
}

</mosaic_0001>

<bundles_post_ra>
// kernel: tpu_custom_call.1
= control target key start
LH: loop header
LB: loop body
LE: loop exit
PB: predicated region body
PF: predicated region fallthrough
CT: control target
= control target key end

     0   :  { %12 = vsyncpa [#allocation3], 0  ;;  %s1285_s0 = inlined_call_operand.vmem [shape: f32[8,1], index: 0, kind: input, shape index: {}]   ;;  %s1286_s1 = inlined_call_operand.vmem [shape: f32[1,256], index: 1, kind: input, shape index: {}]   ;;  %s1287_s2 = inlined_call_operand.vmem [shape: f32[1,256], index: 2, kind: input, shape index: {}]   ;;  %s1288_s3 = inlined_call_operand.hbm [shape: bf16[256,256], index: 3, kind: input, shape index: {}]   ;;  %s1289_s4 = inlined_call_operand.vmem [shape: f32[1,256], index: 4, kind: input, shape index: {}]   ;;  %s1290_s5 = inlined_call_operand.hbm [shape: bf16[256,256], index: 5, kind: input, shape index: {}]   ;;  %s1291_s6 = inlined_call_operand.vmem [shape: f32[1,256], index: 6, kind: input, shape index: {}]   ;;  %s1292_s7 = inlined_call_operand.hbm [shape: f32[8,256], index: 7, kind: output, shape index: {}]  }
   0x1   :  { %13 = vsyncpa [#allocation6], 0 }
   0x2   :  { %14 = vsyncpa [#allocation4], 0  ;;  %s1100_s24 = smov [#allocation2]   ;;  %s1028_s28 = scalar_lea.hbm %s1288_s3, 4096 }
   0x3   :  { %s26_s25 = sshll.u32 %s1100_s24, 4  ;;  %p1029_p0 = scmp.ne.s32.totalorder %s1288_s3, %s1028_s28  ;;  %s27_s25 = int_to_ptr.vmem [resolvable:$true] %s26_s25 }
   0x4   :  { %p1032_p1 = scmp.lt.u32.totalorder %s1028_s28, %s1288_s3 }
   0x6   :  { %p1034_p2 = pnand %p1032_p1, %p1029_p0 }
   0x8   :  { %1037 = shalt.err (!%p1034_p2)
}
   0x9   :  { %s1038_s10 = scalar_lea.vmem %s27_s25, 4096  ;;  %p1043_p4 = scmp.lt.s32.totalorder %s27_s25, %s27_s25 }
   0xa   :  { %p1039_p3 = scmp.ne.s32.totalorder %s27_s25, %s1038_s10  ;;  %p1044_p5 = scmp.lt.s32.totalorder %s1038_s10, %s1038_s10 }
   0xc   :  { %p1045_p6 = por %p1044_p5, %p1043_p4 }
   0xe   :  { %p1046_p7 = pnand %p1045_p6, %p1039_p3 }
  0x10   :  { %1049 = shalt.err (!%p1046_p7)
}
  0x11   :  { %s1101_s11 = smov 128   ;;  %s1102_s12 = smov 8  }
  0x12   :  { %32 = dma.hbm_to_vmem [thread:$0]  %s1288_s3, 4096, %s27_s25, [#allocation3], %s1101_s11, %s1101_s11, %s1102_s12  }
  0x13   :  { %s1103_s15 = smov [#allocation5]   ;;  %s1050_s19 = scalar_lea.hbm %s1290_s5, 4096 }
  0x14   :  { %s40_s16 = sshll.u32 %s1103_s15, 4  ;;  %p1051_p8 = scmp.ne.s32.totalorder %s1290_s5, %s1050_s19  ;;  %s41_s16 = int_to_ptr.vmem [resolvable:$true] %s40_s16 }
  0x15   :  { %p1054_p9 = scmp.lt.u32.totalorder %s1050_s19, %s1290_s5 }
  0x17   :  { %p1056_p10 = pnand %p1054_p9, %p1051_p8 }
  0x19   :  { %1059 = shalt.err (!%p1056_p10)
}
  0x1a   :  { %s1060_s24 = scalar_lea.vmem %s41_s16, 4096  ;;  %p1065_p12 = scmp.lt.s32.totalorder %s41_s16, %s41_s16 }
  0x1b   :  { %p1061_p11 = scmp.ne.s32.totalorder %s41_s16, %s1060_s24  ;;  %p1066_p13 = scmp.lt.s32.totalorder %s1060_s24, %s1060_s24 }
  0x1d   :  { %p1067_p0 = por %p1066_p13, %p1065_p12 }
  0x1f   :  { %p1068_p1 = pnand %p1067_p0, %p1061_p11 }
  0x21   :  { %1071 = shalt.err (!%p1068_p1)
}
  0x22   :  { %46 = dma.hbm_to_vmem [thread:$0]  %s1290_s5, 4096, %s41_s16, [#allocation6], %s1101_s11, %s1101_s11, %s1102_s12  }
  0x23   :  { %1094 = dma.done.wait [#allocation3], 4096  }
  0x24   :  { %1095 = vsyncadd [#allocation3], 4294963200 }
  0x25   :  { %1096 = dma.done.wait [#allocation6], 4096  }
  0x26   :  { %1097 = vsyncadd [#allocation6], 4294963200  ;;  %v1104_v0 = vmov 0   ;;  %v57_v1 = vld [vmem:[%s1285_s0] sm:$0xff]  ;;  %v919_v4 = vld [vmem:[#allocation2 + $0x14] ss:$8 sps:$4 sm:$0xff]   ;;  %v65_v43 = vlaneseq }
  0x27   :  { %915 = vset.pattern.permute.xlu0 %v1104_v0  ;;  %v916_v2 = vld [vmem:[#allocation2 + $0x4] ss:$8 sps:$4 sm:$0xff]   ;;  %v918_v3 = vld [vmem:[#allocation2] ss:$8 sps:$4 sm:$0xff]   ;;  %v921_v5 = vld [vmem:[#allocation2 + $0x10] ss:$8 sps:$4 sm:$0xff]  }
  0x28   :  { %61 = vperm.xlu0 %915, %v57_v1   ;;  %505 = vmatprep.subr.bf16.mxu0 %v916_v2  ;;  %v922_v6 = vld [vmem:[#allocation2 + $0x24] ss:$8 sps:$4 sm:$0xff]   ;;  %v924_v7 = vld [vmem:[#allocation2 + $0x20] ss:$8 sps:$4 sm:$0xff]   ;;  %v925_v8 = vld [vmem:[#allocation2 + $0x34] ss:$8 sps:$4 sm:$0xff]  }
  0x29   :  { %506 = vmatpush1.bf16.msra.mxu0 %v918_v3  ;;  %v927_v9 = vld [vmem:[#allocation2 + $0x30] ss:$8 sps:$4 sm:$0xff]   ;;  %v928_v10 = vld [vmem:[#allocation2 + $0x44] ss:$8 sps:$4 sm:$0xff]   ;;  %v930_v11 = vld [vmem:[#allocation2 + $0x40] ss:$8 sps:$4 sm:$0xff]  }
  0x2a   :  { %507 = vmatprep.subr.bf16.mxu0 %v919_v4  ;;  %v931_v12 = vld [vmem:[#allocation2 + $0x54] ss:$8 sps:$4 sm:$0xff]   ;;  %v933_v13 = vld [vmem:[#allocation2 + $0x50] ss:$8 sps:$4 sm:$0xff]   ;;  %v934_v14 = vld [vmem:[#allocation2 + $0x64] ss:$8 sps:$4 sm:$0xff]  }
  0x2b   :  { %v936_v15 = vld [vmem:[#allocation2 + $0x60] ss:$8 sps:$4 sm:$0xff]   ;;  %v937_v16 = vld [vmem:[#allocation2 + $0x74] ss:$8 sps:$4 sm:$0xff]   ;;  %v939_v17 = vld [vmem:[#allocation2 + $0x70] ss:$8 sps:$4 sm:$0xff]  }
  0x2c   :  { %v940_v18 = vld [vmem:[#allocation2 + $0x84] ss:$8 sps:$4 sm:$0xff]   ;;  %v942_v19 = vld [vmem:[#allocation2 + $0x80] ss:$8 sps:$4 sm:$0xff]   ;;  %v943_v20 = vld [vmem:[#allocation2 + $0x94] ss:$8 sps:$4 sm:$0xff]  }
  0x2d   :  { %508 = vmatpush1.bf16.msra.mxu0 %v921_v5  ;;  %v945_v21 = vld [vmem:[#allocation2 + $0x90] ss:$8 sps:$4 sm:$0xff]   ;;  %v946_v22 = vld [vmem:[#allocation2 + $0xa4] ss:$8 sps:$4 sm:$0xff]   ;;  %v948_v23 = vld [vmem:[#allocation2 + $0xa0] ss:$8 sps:$4 sm:$0xff]  }
  0x2e   :  { %509 = vmatprep.subr.bf16.mxu0 %v922_v6  ;;  %v949_v24 = vld [vmem:[#allocation2 + $0xb4] ss:$8 sps:$4 sm:$0xff]   ;;  %v951_v25 = vld [vmem:[#allocation2 + $0xb0] ss:$8 sps:$4 sm:$0xff]   ;;  %v952_v26 = vld [vmem:[#allocation2 + $0xc4] ss:$8 sps:$4 sm:$0xff]  }
  0x2f   :  { %v954_v27 = vld [vmem:[#allocation2 + $0xc0] ss:$8 sps:$4 sm:$0xff]   ;;  %v955_v28 = vld [vmem:[#allocation2 + $0xd4] ss:$8 sps:$4 sm:$0xff]   ;;  %v957_v29 = vld [vmem:[#allocation2 + $0xd0] ss:$8 sps:$4 sm:$0xff]  }
  0x30   :  { %v958_v30 = vld [vmem:[#allocation2 + $0xe4] ss:$8 sps:$4 sm:$0xff]   ;;  %v960_v31 = vld [vmem:[#allocation2 + $0xe0] ss:$8 sps:$4 sm:$0xff]   ;;  %v961_v32 = vld [vmem:[#allocation2 + $0xf4] ss:$8 sps:$4 sm:$0xff]  }
  0x31   :  { %510 = vmatpush1.bf16.msra.mxu0 %v924_v7  ;;  %v963_v33 = vld [vmem:[#allocation2 + $0xf0] ss:$8 sps:$4 sm:$0xff]   ;;  %v964_v34 = vld [vmem:[#allocation5 + $0x4] ss:$8 sps:$4 sm:$0xff]   ;;  %v966_v35 = vld [vmem:[#allocation5] ss:$8 sps:$4 sm:$0xff]  }
  0x32   :  { %511 = vmatprep.subr.bf16.mxu0 %v925_v8  ;;  %v967_v36 = vld [vmem:[#allocation5 + $0x14] ss:$8 sps:$4 sm:$0xff]   ;;  %764 = vmatprep.subr.bf16.mxu1 %v964_v34  ;;  %v969_v37 = vld [vmem:[#allocation5 + $0x10] ss:$8 sps:$4 sm:$0xff]   ;;  %v970_v38 = vld [vmem:[#allocation5 + $0x24] ss:$8 sps:$4 sm:$0xff]  }
  0x33   :  { %765 = vmatpush1.bf16.msra.mxu1 %v966_v35  ;;  %v972_v39 = vld [vmem:[#allocation5 + $0x20] ss:$8 sps:$4 sm:$0xff]   ;;  %v973_v40 = vld [vmem:[#allocation5 + $0x34] ss:$8 sps:$4 sm:$0xff]   ;;  %v975_v41 = vld [vmem:[#allocation5 + $0x30] ss:$8 sps:$4 sm:$0xff]  }
  0x34   :  { %766 = vmatprep.subr.bf16.mxu1 %v967_v36  ;;  %v976_v42 = vld [vmem:[#allocation5 + $0x44] ss:$8 sps:$4 sm:$0xff]   ;;  %v978_v44 = vld [vmem:[#allocation5 + $0x40] ss:$8 sps:$4 sm:$0xff]   ;;  %v979_v45 = vld [vmem:[#allocation5 + $0x54] ss:$8 sps:$4 sm:$0xff]  }
  0x35   :  { %512 = vmatpush1.bf16.msra.mxu0 %v927_v9  ;;  %v66_v46 = vshrl.u32 %v65_v43, 7  ;;  %v981_v47 = vld [vmem:[#allocation5 + $0x50] ss:$8 sps:$4 sm:$0xff]   ;;  %v982_v48 = vld [vmem:[#allocation5 + $0x64] ss:$8 sps:$4 sm:$0xff]   ;;  %s1111_s8 = smov [#allocation7]  }
  0x36   :  { %513 = vmatprep.subr.bf16.mxu0 %v928_v10  ;;  %v58_v51 = vld [vmem:[%s1286_s1] sm:$0x3]  ;;  %v1110_v36 = vmov 1326507024   ;;  %s813_s9 = sshll.u32 %s1111_s8, 4  ;;  %s814_s9 = int_to_ptr.vmem [resolvable:$true] %s813_s9 }
  0x37   :  { %767 = vmatpush1.bf16.msra.mxu1 %v969_v37  ;;  %v1179_v49 = vsub.s32 0, %v66_v46  ;;  %v1181_v50 = vsub.s32 1, %v66_v46  ;;  %v984_v52 = vld [vmem:[#allocation5 + $0x60] ss:$8 sps:$4 sm:$0xff]   ;;  %s1072_s10 = scalar_lea.vmem %s814_s9, 256  ;;  %p1077_p3 = scmp.lt.s32.totalorder %s814_s9, %s814_s9 }
  0x38   :  { %768 = vmatprep.subr.bf16.mxu1 %v970_v38  ;;  %v77_v53 = vld [vmem:[%s1287_s2] sm:$0x3]  ;;  %p1073_p2 = scmp.ne.s32.totalorder %s814_s9, %s1072_s10  ;;  %p1078_p4 = scmp.lt.s32.totalorder %s1072_s10, %s1072_s10 }
  0x39   :  { %514 = vmatpush1.bf16.msra.mxu0 %v930_v11  ;;  %v68_v54 = vrot.slane %v58_v51, %v1179_v49  ;;  %v72_v55 = vrot.slane %v58_v51, %v1181_v50  ;;  %v82_v56 = vrot.slane %v77_v53, %v1179_v49  ;;  %v86_v57 = vrot.slane %v77_v53, %v1181_v50 }
  0x3a   :  { %515 = vmatprep.subr.bf16.mxu0 %v931_v12  ;;  %p1079_p5 = por %p1078_p4, %p1077_p3 }
  0x3b   :  { %769 = vmatpush1.bf16.msra.mxu1 %v972_v39 }
  0x3c   :  { %770 = vmatprep.subr.bf16.mxu1 %v973_v40  ;;  %p1080_p6 = pnand %p1079_p5, %p1073_p2 }
  0x3d   :  { %516 = vmatpush1.bf16.msra.mxu0 %v933_v13 }
  0x3e   :  { %517 = vmatprep.subr.bf16.mxu0 %v934_v14 }
  0x3f   :  { %771 = vmatpush1.bf16.msra.mxu1 %v975_v41 }
  0x40   :  { %772 = vmatprep.subr.bf16.mxu1 %v976_v42 }
  0x41   :  { %518 = vmatpush1.bf16.msra.mxu0 %v936_v15 }
  0x42   :  { %519 = vmatprep.subr.bf16.mxu0 %v937_v16 }
  0x43   :  { %773 = vmatpush1.bf16.msra.mxu1 %v978_v44 }
  0x44   :  { %774 = vmatprep.subr.bf16.mxu1 %v979_v45 }
  0x45   :  { %520 = vmatpush1.bf16.msra.mxu0 %v939_v17 }
  0x46   :  { %521 = vmatprep.subr.bf16.mxu0 %v940_v18 }
  0x47   :  { %775 = vmatpush1.bf16.msra.mxu1 %v981_v47 }
  0x48   :  { %776 = vmatprep.subr.bf16.mxu1 %v982_v48 }
  0x49   :  { %522 = vmatpush1.bf16.msra.mxu0 %v942_v19  ;;  %v1105_v19 = vmov 683565275  }
  0x4a   :  { %523 = vmatprep.subr.bf16.mxu0 %v943_v20 }
  0x4b   :  { %777 = vmatpush1.bf16.msra.mxu1 %v984_v52 }
  0x4d   :  { %524 = vmatpush1.bf16.msra.mxu0 %v945_v21 }
  0x4e   :  { %525 = vmatprep.subr.bf16.mxu0 %v946_v22 }
  0x51   :  { %526 = vmatpush1.bf16.msra.mxu0 %v948_v23  ;;  %v1106_v23 = vmov 2475754826  }
  0x52   :  { %527 = vmatprep.subr.bf16.mxu0 %v949_v24 }
  0x55   :  { %528 = vmatpush1.bf16.msra.mxu0 %v951_v25  ;;  %v1107_v25 = vmov 2131351028  }
  0x56   :  { %529 = vmatprep.subr.bf16.mxu0 %v952_v26 }
  0x59   :  { %530 = vmatpush1.bf16.msra.mxu0 %v954_v27  ;;  %v1108_v27 = vmov 2102212464  }
  0x5a   :  { %531 = vmatprep.subr.bf16.mxu0 %v955_v28 }
  0x5d   :  { %532 = vmatpush1.bf16.msra.mxu0 %v957_v29  ;;  %v1109_v29 = vmov 920167782  }
  0x5e   :  { %533 = vmatprep.subr.bf16.mxu0 %v958_v30 }
  0x61   :  { %534 = vmatpush1.bf16.msra.mxu0 %v960_v31 }
  0x62   :  { %535 = vmatprep.subr.bf16.mxu0 %v961_v32 }
  0x65   :  { %536 = vmatpush1.bf16.msra.mxu0 %v963_v33 }
  0xa7   :  { %v62_v58 = vpop.permute.xlu0 %61 }
  0xa8   :  { %v75_v59 = vmul.f32 %v68_v54, %v62_v58  ;;  %v76_v60 = vmul.f32 %v72_v55, %v62_v58 }
  0xaa   :  { %v1193_v61 = vadd.f32 %v82_v56, %v75_v59  ;;  %v1195_v62 = vadd.f32 %v86_v57, %v76_v60 }
  0xac   :  { %v91_v63 = vand.u32 2147483647, %v1193_v61  ;;  %v94_v0 = vand.u32 2139095040, %v1193_v61  ;;  %v198_v1 = vand.u32 2139095040, %v1195_v62  ;;  %v195_v5 = vand.u32 2147483647, %v1195_v62 }
  0xad   :  { %vm93_vm14 = vcmp.lt.s32.totalorder %v1193_v61, 0 }
  0xae   :  { %v95_v2 = vshrl.u32 %v94_v0, 23  ;;  %v199_v3 = vshrl.u32 %v198_v1, 23  ;;  %v98_v4 = vand.u32 8388607, %v91_v63  ;;  %v1205_v11 = vand.u32 8388607, %v195_v5 }
  0xaf   :  { %vm1248_vm15 = vcmp.le.f32.partialorder %v91_v63, 0.7853982 }
  0xb0   :  { %v823_v6 = vadd.s32 4294967169, %v95_v2  ;;  %v827_v7 = vadd.s32 4294967169, %v199_v3  ;;  %v99_v10 = vor.u32 8388608, %v98_v4  ;;  %v203_v17 = vor.u32 8388608, %v1205_v11 }
  0xb2   :  { %v101_v8 = vadd.s32 1, %v823_v6  ;;  %v205_v9 = vadd.s32 1, %v827_v7  ;;  %v1207_v16 = vshll.u32 %v99_v10, 8 }
  0xb4   :  { %vm102_vm0 = vcmp.gt.s32.totalorder %v101_v8, 0  ;;  %vm206_vm1 = vcmp.gt.s32.totalorder %v205_v9, 0 }
  0xb5   :  { %v103_v12 = vsel %vm102_vm0, %v101_v8, 0  ;;  %v207_v13 = vsel %vm206_vm1, %v205_v9, 0  ;;  %vm197_vm0 = vcmp.lt.s32.totalorder %v1195_v62, 0  ;;  %vm196_vm1 = vcmp.le.f32.partialorder %v195_v5, 0.7853982 }
  0xb6   :  { %v104_v14 = vshrl.u32 %v103_v12, 5  ;;  %v105_v15 = vand.u32 31, %v103_v12  ;;  %v1210_v21 = vshrl.u32 %v207_v13, 5  ;;  %v209_v22 = vand.u32 31, %v207_v13 }
  0xb7   :  { %v243_v13 = vshll.u32 %v203_v17, 8 }
  0xb8   :  { %v106_v18 = vsub.s32 32, %v105_v15  ;;  %v108_v20 = vshll.u32 %v1105_v19, %v105_v15  ;;  %v111_v24 = vshll.u32 %v1106_v23, %v105_v15  ;;  %v114_v26 = vshll.u32 %v1107_v25, %v105_v15 }
  0xb9   :  { %v117_v28 = vshll.u32 %v1108_v27, %v105_v15  ;;  %v120_v30 = vshll.u32 %v1109_v29, %v105_v15  ;;  %vm123_vm2 = vcmp.lt.s32.totalorder %v104_v14, 1  ;;  %vm124_vm3 = vcmp.lt.s32.totalorder %v104_v14, 2 }
  0xba   :  { %v109_v31 = vshrl.u32 %v1106_v23, %v106_v18  ;;  %v112_v32 = vshrl.u32 %v1107_v25, %v106_v18  ;;  %v115_v33 = vshrl.u32 %v1108_v27, %v106_v18  ;;  %v107_v34 = vshrl.u32 %v1105_v19, %v106_v18 }
  0xbb   :  { %v118_v35 = vshrl.u32 %v1109_v29, %v106_v18  ;;  %v121_v37 = vshrl.u32 %v1110_v36, %v106_v18  ;;  %v210_v41 = vsub.s32 32, %v209_v22  ;;  %vm125_vm4 = vcmp.lt.s32.totalorder %v104_v14, 3 }
  0xbc   :  { %v110_v38 = vor.u32 %v109_v31, %v108_v20  ;;  %v113_v39 = vor.u32 %v112_v32, %v111_v24  ;;  %v116_v40 = vor.u32 %v115_v33, %v114_v26  ;;  %vm126_vm5 = vcmp.lt.s32.totalorder %v104_v14, 4 }
  0xbd   :  { %v119_v42 = vor.u32 %v118_v35, %v117_v28  ;;  %v122_v43 = vor.u32 %v121_v37, %v120_v30  ;;  %v212_v53 = vshll.u32 %v1105_v19, %v209_v22  ;;  %v213_v56 = vshrl.u32 %v1106_v23, %v210_v41 }
  0xbe   :  { %v127_v44 = vsel %vm123_vm2, %v107_v34, %v110_v38  ;;  %v128_v45 = vsel %vm126_vm5, %v116_v40, 2102212464  ;;  %v131_v46 = vsel %vm123_vm2, %v110_v38, %v113_v39  ;;  %v135_v47 = vsel %vm123_vm2, %v113_v39, %v116_v40 }
  0xbf   :  { %v129_v48 = vsel %vm125_vm4, %v113_v39, %v128_v45  ;;  %v132_v51 = vsel %vm126_vm5, %v119_v42, 920167782  ;;  %v136_v52 = vsel %vm126_vm5, %v122_v43, 1326507024  ;;  %v215_v57 = vshll.u32 %v1106_v23, %v209_v22 }
  0xc0   :  { %v133_v54 = vsel %vm125_vm4, %v116_v40, %v132_v51  ;;  %v137_v55 = vsel %vm125_vm4, %v119_v42, %v136_v52  ;;  %v130_v58 = vsel %vm124_vm3, %v127_v44, %v129_v48  ;;  %v216_v0 = vshrl.u32 %v1107_v25, %v210_v41 }
  0xc1   :  { %v134_v59 = vsel %vm124_vm3, %v131_v46, %v133_v54  ;;  %v138_v60 = vsel %vm124_vm3, %v135_v47, %v137_v55  ;;  %v214_v6 = vor.u32 %v213_v56, %v212_v53  ;;  %v218_v8 = vshll.u32 %v1107_v25, %v209_v22 }
  0xc2   :  { %v1219_v1 = vmul.u32.u64.low %v1207_v16, %v138_v60  ;;  %v1220_v2 = vmul.u32.u64.high %v1207_v16, %v138_v60, %v1219_v1  ;;  %v1223_v3 = vmul.u32.u64.low %v1207_v16, %v134_v59  ;;  %v1224_v4 = vmul.u32.u64.high %v1207_v16, %v134_v59, %v1223_v3 }
  0xc3   :  { %v217_v7 = vor.u32 %v216_v0, %v215_v57  ;;  %v219_v9 = vshrl.u32 %v1108_v27, %v210_v41  ;;  %v221_v10 = vshll.u32 %v1108_v27, %v209_v22  ;;  %v222_v11 = vshrl.u32 %v1109_v29, %v210_v41 }
  0xc4   :  { %v225_v12 = vshrl.u32 %v1110_v36, %v210_v41  ;;  %v146_v14 = vmul.u32 %v1207_v16, %v130_v58  ;;  %v211_v15 = vshrl.u32 %v1105_v19, %v210_v41  ;;  %v224_v20 = vshll.u32 %v1109_v29, %v209_v22 }
  0xc5   :  { %v220_v18 = vor.u32 %v219_v9, %v218_v8  ;;  %vm148_vm6 = vc.u32 %v1220_v2, %v1223_v3  ;;  %v149_v23 = vadd.s32 1, %v1224_v4  ;;  %v223_v24 = vor.u32 %v222_v11, %v221_v10 }
  0xc6   :  { %vm227_vm7 = vcmp.lt.s32.totalorder %v1210_v21, 1  ;;  %v226_v26 = vor.u32 %v225_v12, %v224_v20  ;;  %vm229_vm8 = vcmp.lt.s32.totalorder %v1210_v21, 3  ;;  %vm230_vm9 = vcmp.lt.s32.totalorder %v1210_v21, 4 }
  0xc7   :  { %v235_v25 = vsel %vm227_vm7, %v214_v6, %v217_v7  ;;  %v150_v17 = vsel %vm148_vm6, %v149_v23, %v1224_v4  ;;  %v232_v27 = vsel %vm230_vm9, %v220_v18, 2102212464  ;;  %v236_v16 = vsel %vm230_vm9, %v223_v24, 920167782 }
  0xc8   :  { %v239_v19 = vsel %vm227_vm7, %v217_v7, %v220_v18  ;;  %v151_v28 = vadd.s32 %v150_v17, %v146_v14  ;;  %vm228_vm10 = vcmp.lt.s32.totalorder %v1210_v21, 2  ;;  %v237_v22 = vsel %vm229_vm8, %v220_v18, %v236_v16 }
  0xc9   :  { %v240_v29 = vsel %vm230_vm9, %v226_v26, 1326507024  ;;  %v231_v30 = vsel %vm227_vm7, %v211_v15, %v214_v6  ;;  %v233_v31 = vsel %vm229_vm8, %v217_v7, %v232_v27  ;;  %v238_v32 = vsel %vm228_vm10, %v235_v25, %v237_v22 }
  0xca   :  { %v241_v33 = vsel %vm229_vm8, %v223_v24, %v240_v29  ;;  %v152_v34 = vadd.s32 536870912, %v151_v28  ;;  %v1234_v36 = vmul.u32.u64.low %v243_v13, %v238_v32  ;;  %v1235_v37 = vmul.u32.u64.high %v243_v13, %v238_v32, %v1234_v36 }
  0xcb   :  { %v242_v35 = vsel %vm228_vm10, %v239_v19, %v241_v33  ;;  %v234_v41 = vsel %vm228_vm10, %v231_v30, %v233_v31  ;;  %v147_v59 = vadd.s32 %v1223_v3, %v1220_v2  ;;  %vm183_vm6 = vweird.f32 %v1193_v61 }
  0xcc   :  { %v1237_v38 = vmul.u32.u64.low %v243_v13, %v242_v35  ;;  %v1238_v39 = vmul.u32.u64.high %v243_v13, %v242_v35, %v1237_v38  ;;  %v153_v40 = vshrl.u32 %v152_v34, 30  ;;  %v253_v43 = vadd.s32 1, %v1235_v37 }
  0xcd   :  { %v250_v21 = vmul.u32 %v243_v13, %v234_v41  ;;  %vm287_vm9 = vweird.f32 %v1195_v62 }
  0xce   :  { %v154_v42 = vshll.u32 %v153_v40, 30  ;;  %vm252_vm11 = vc.u32 %v1238_v39, %v1234_v36  ;;  %v251_v18 = vadd.s32 %v1234_v36, %v1238_v39  ;;  %v177_v16 = vsub.s32 4, %v153_v40 }
  0xcf   :  { %v254_v45 = vsel %vm252_vm11, %v253_v43, %v1235_v37 }
  0xd0   :  { %v155_v44 = vsub.s32 %v151_v28, %v154_v42  ;;  %v255_v46 = vadd.s32 %v254_v45, %v250_v21  ;;  %v178_v32 = vsel %vm93_vm14, %v177_v16, %v153_v40 }
  0xd1   :  { %v180_v35 = vsel %vm1248_vm15, 0, %v178_v32 }
  0xd2   :  { %v157_v47 = vsub.s32 0, %v155_v44  ;;  %v256_v48 = vadd.s32 536870912, %v255_v46  ;;  %v184_v38 = vadd.s32 3, %v180_v35 }
  0xd4   :  { %v824_v51 = vmin.u32 %v157_v47, %v155_v44  ;;  %v257_v52 = vshrl.u32 %v256_v48, 30  ;;  %v185_v43 = vand.u32 3, %v184_v38 }
  0xd6   :  { %v159_v53 = vclz %v824_v51  ;;  %v258_v54 = vshll.u32 %v257_v52, 30  ;;  %v281_v34 = vsub.s32 4, %v257_v52  ;;  %vm187_vm2 = vcmp.eq.s32.totalorder %v185_v43, 0 }
  0xd7   :  { %vm190_vm3 = vcmp.eq.s32.totalorder %v185_v43, 2  ;;  %vm186_vm4 = vcmp.lt.s32.totalorder %v185_v43, 2 }
  0xd8   :  { %v825_v55 = vadd.s32 4294967294, %v159_v53  ;;  %v259_v56 = vsub.s32 %v255_v46, %v258_v54  ;;  %v282_v37 = vsel %vm197_vm0, %v281_v34, %v257_v52 }
  0xd9   :  { %v284_v40 = vsel %vm196_vm1, 0, %v282_v37 }
  0xda   :  { %vm826_vm12 = vcmp.lt.s32.totalorder %v825_v55, 0  ;;  %v261_v58 = vsub.s32 0, %v259_v56  ;;  %v288_v45 = vadd.s32 3, %v284_v40  ;;  %v592_v40 = vld [vmem:[%s1291_s6] sm:$0x3] }
  0xdb   :  { %v162_v57 = vsel %vm826_vm12, 0, %v825_v55  ;;  %v601_v43 = vrot.slane %v592_v40, %v1181_v50 }
  0xdc   :  { %v163_v60 = vsub.s32 32, %v162_v57  ;;  %v167_v0 = vsub.s32 4294967266, %v162_v57  ;;  %v828_v1 = vmin.u32 %v261_v58, %v259_v56  ;;  %v164_v4 = vshll.u32 %v155_v44, %v162_v57 }
  0xdd   :  { %v289_v48 = vand.u32 3, %v288_v45 }
  0xde   :  { %v165_v6 = vshrl.u32 %v147_v59, %v163_v60  ;;  %v168_v7 = vadd.s32 127, %v167_v0  ;;  %v263_v8 = vclz %v828_v1  ;;  %v985_v1 = vld [vmem:[#allocation5 + $0x74] ss:$8 sps:$4 sm:$0xff]  }
  0xdf   :  { %vm294_vm5 = vcmp.eq.s32.totalorder %v289_v48, 2  ;;  %vm291_vm7 = vcmp.eq.s32.totalorder %v289_v48, 0  ;;  %vm290_vm8 = vcmp.lt.s32.totalorder %v289_v48, 2  ;;  %778 = vmatprep.subr.bf16.mxu1 %v985_v1 }
  0xe0   :  { %v166_v9 = vor.u32 %v165_v6, %v164_v4  ;;  %v169_v10 = vshll.u32 %v168_v7, 23  ;;  %v829_v11 = vadd.s32 4294967294, %v263_v8  ;;  %v987_v4 = vld [vmem:[#allocation5 + $0x70] ss:$8 sps:$4 sm:$0xff]   ;;  %v988_v6 = vld [vmem:[#allocation5 + $0x84] ss:$8 sps:$4 sm:$0xff]  }
  0xe1   :  { %779 = vmatpush1.bf16.msra.mxu1 %v987_v4  ;;  %v990_v7 = vld [vmem:[#allocation5 + $0x80] ss:$8 sps:$4 sm:$0xff]   ;;  %v993_v8 = vld [vmem:[#allocation5 + $0x90] ss:$8 sps:$4 sm:$0xff]  }
  0xe2   :  { %v170_v12 = vor.u32 4788187, %v169_v10  ;;  %vm830_vm13 = vcmp.lt.s32.totalorder %v829_v11, 0  ;;  %v173_v14 = vcvt.s32.f32 %v166_v9  ;;  %780 = vmatprep.subr.bf16.mxu1 %v988_v6  ;;  %v994_v9 = vld [vmem:[#allocation5 + $0xa4] ss:$8 sps:$4 sm:$0xff]  }
  0xe3   :  { %v266_v15 = vsel %vm830_vm13, 0, %v829_v11  ;;  %v997_v10 = vld [vmem:[#allocation5 + $0xb4] ss:$8 sps:$4 sm:$0xff]   ;;  %v999_v11 = vld [vmem:[#allocation5 + $0xb0] ss:$8 sps:$4 sm:$0xff]  }
  0xe4   :  { %v171_v13 = vand.u32 2147483647, %v170_v12  ;;  %v267_v20 = vsub.s32 32, %v266_v15  ;;  %v271_v23 = vsub.s32 4294967266, %v266_v15  ;;  %v268_v3 = vshll.u32 %v259_v56, %v266_v15  ;;  %v1000_v12 = vld [vmem:[#allocation5 + $0xc4] ss:$8 sps:$4 sm:$0xff]  }
  0xe5   :  { %781 = vmatpush1.bf16.msra.mxu1 %v990_v7  ;;  %v1005_v15 = vld [vmem:[#allocation5 + $0xd0] ss:$8 sps:$4 sm:$0xff]  }
  0xe6   :  { %v174_v2 = vmul.f32 %v173_v14, %v171_v13  ;;  %v269_v24 = vshrl.u32 %v251_v18, %v267_v20  ;;  %v272_v26 = vadd.s32 127, %v271_v23  ;;  %v1002_v13 = vld [vmem:[#allocation5 + $0xc0] ss:$8 sps:$4 sm:$0xff]   ;;  %v1003_v14 = vld [vmem:[#allocation5 + $0xd4] ss:$8 sps:$4 sm:$0xff]  }
  0xe7   :  { %v1006_v18 = vld [vmem:[#allocation5 + $0xe4] ss:$8 sps:$4 sm:$0xff]   ;;  %v1008_v20 = vld [vmem:[#allocation5 + $0xe0] ss:$8 sps:$4 sm:$0xff]   ;;  %v1009_v23 = vld [vmem:[#allocation5 + $0xf4] ss:$8 sps:$4 sm:$0xff]  }
  0xe8   :  { %v175_v25 = vxor.u32 2147483648, %v174_v2  ;;  %v270_v17 = vor.u32 %v269_v24, %v268_v3  ;;  %v273_v27 = vshll.u32 %v272_v26, 23  ;;  %v333_v3 = vld [vmem:[%s1289_s4] sm:$0x3] }
  0xe9   :  { %v338_v24 = vrot.slane %v333_v3, %v1179_v49  ;;  %v342_v26 = vrot.slane %v333_v3, %v1181_v50 }
  0xea   :  { %v176_v19 = vsel %vm93_vm14, %v175_v25, %v174_v2  ;;  %v274_v22 = vor.u32 4788187, %v273_v27  ;;  %v277_v31 = vcvt.s32.f32 %v270_v17  ;;  %v1011_v2 = vld [vmem:[#allocation5 + $0xf0] ss:$8 sps:$4 sm:$0xff]  }
  0xeb   :  { %v179_v29 = vsel %vm1248_vm15, %v1193_v61, %v176_v19  ;;  %v991_v61 = vld [vmem:[#allocation5 + $0x94] ss:$8 sps:$4 sm:$0xff]  }
  0xec   :  { %1012 = vcosq.f32 %v179_v29  ;;  %v275_v30 = vand.u32 2147483647, %v274_v22  ;;  %782 = vmatprep.subr.bf16.mxu1 %v991_v61 }
  0xed   :  { %1014 = vsinq.f32 %v179_v29  ;;  %783 = vmatpush1.bf16.msra.mxu1 %v993_v8 }
  0xee   :  { %v278_v33 = vmul.f32 %v277_v31, %v275_v30  ;;  %784 = vmatprep.subr.bf16.mxu1 %v994_v9 }
  0xf0   :  { %v279_v36 = vxor.u32 2147483648, %v278_v33 }
  0xf2   :  { %v280_v63 = vsel %vm197_vm0, %v279_v36, %v278_v33 }
  0xf3   :  { %v283_v39 = vsel %vm196_vm1, %v1195_v62, %v280_v63  ;;  %v996_v62 = vld [vmem:[#allocation5 + $0xa0] ss:$8 sps:$4 sm:$0xff]  }
  0xf4   :  { %1016 = vcosq.f32 %v283_v39  ;;  %785 = vmatpush1.bf16.msra.mxu1 %v996_v62 }
  0xf5   :  { %1018 = vsinq.f32 %v283_v39  ;;  %786 = vmatprep.subr.bf16.mxu1 %v997_v10 }
  0xf6   :  { %v1013_v41 = vpop.eup %1012 }
  0xf7   :  { %v1015_v42 = vpop.eup %1014  ;;  %v191_v44 = vxor.u32 2147483648, %v1013_v41 }
  0xf8   :  { %v188_v21 = vxor.u32 2147483648, %v1015_v42  ;;  %787 = vmatpush1.bf16.msra.mxu1 %v999_v11 }
  0xf9   :  { %v192_v47 = vsel %vm190_vm3, %v191_v44, %v1015_v42  ;;  %788 = vmatprep.subr.bf16.mxu1 %v1000_v12  ;;  %v597_v42 = vrot.slane %v592_v40, %v1179_v49 }
  0xfa   :  { %v189_v46 = vsel %vm187_vm2, %v1013_v41, %v188_v21 }
  0xfb   :  { %v193_v51 = vsel %vm186_vm4, %v189_v46, %v192_v47 }
  0xfc   :  { %v194_v56 = vsel %vm183_vm6, nan, %v193_v51  ;;  %789 = vmatpush1.bf16.msra.mxu1 %v1002_v13 }
  0xfd   :  { %v299_v60 = vpack.c.bf16 %v194_v56, %v194_v56  ;;  %790 = vmatprep.subr.bf16.mxu1 %v1003_v14 }
  0xfe   :  { %v1017_v5 = vpop.eup %1016 }
  0xff   :  { %v1019_v52 = vpop.eup %1018  ;;  %v295_v53 = vxor.u32 2147483648, %v1017_v5 }
 0x100   :  { %v292_v54 = vxor.u32 2147483648, %v1019_v52  ;;  %791 = vmatpush1.bf16.msra.mxu1 %v1005_v15 }
 0x101   :  { %v296_v55 = vsel %vm294_vm5, %v295_v53, %v1019_v52  ;;  %792 = vmatprep.subr.bf16.mxu1 %v1006_v18 }
 0x102   :  { %v293_v57 = vsel %vm291_vm7, %v1017_v5, %v292_v54 }
 0x103   :  { %v297_v58 = vsel %vm290_vm8, %v293_v57, %v296_v55 }
 0x104   :  { %v298_v59 = vsel %vm287_vm9, nan, %v297_v58  ;;  %793 = vmatpush1.bf16.msra.mxu1 %v1008_v20 }
 0x105   :  { %v300_v0 = vpack.c.bf16 %v298_v59, %v298_v59  ;;  %794 = vmatprep.subr.bf16.mxu1 %v1009_v23 }
 0x107   :  { %537 = vmatprep.mubr.bf16.mxu0 %v300_v0 }
 0x108   :  { %538 = vmatmul.mubr.bf16.vlgmr.msra.gmra.mrb[0].mxu0 %v299_v60  ;;  %795 = vmatpush1.bf16.msra.mxu1 %v1011_v2 }
 0x1db   :  { %v539_v25 = vpop.f32.mrb[0].mxu0 }
 0x1dc   :  { %v540_v17 = vadd.f32 %v539_v25, %v338_v24  ;;  %v541_v27 = vpop.f32.mrb[1].mxu0 }
 0x1dd   :  { %v542_v16 = vadd.f32 %v541_v27, %v342_v26  ;;  %v543_v19 = vpop.f32.mrb[2].mxu0 }
 0x1de   :  { %v546_v28 = vsub.f32 0.0, %v540_v17  ;;  %v544_v22 = vpop.f32.mrb[3].mxu0 }
 0x1df   :  { %v547_v29 = vsub.f32 0.0, %v542_v16 }
 0x1e0   :  { %v548_v30 = vmul.f32 1.442695, %v546_v28 }
 0x1e1   :  { %v550_v31 = vmul.f32 1.442695, %v547_v29 }
 0x1e2   :  { %1020 = vpow2.f32 %v548_v30 }
 0x1e3   :  { %1022 = vpow2.f32 %v550_v31 }
 0x1ec   :  { %v1021_v32 = vpop.eup %1020 }
 0x1ed   :  { %v1023_v33 = vpop.eup %1022  ;;  %v552_v34 = vadd.f32 1.0, %v1021_v32 }
 0x1ee   :  { %v553_v35 = vadd.f32 1.0, %v1023_v33 }
 0x1ef   :  { %1024 = vrcp.f32 %v552_v34 }
 0x1f0   :  { %1026 = vrcp.f32 %v553_v35 }
 0x1f9   :  { %v1025_v36 = vpop.eup %1024 }
 0x1fa   :  { %v1027_v63 = vpop.eup %1026  ;;  %v556_v37 = vmul.f32 %v1025_v36, %v540_v17 }
 0x1fb   :  { %v557_v38 = vmul.f32 %v1027_v63, %v542_v16 }
 0x1fc   :  { %v558_v41 = vpack.c.bf16 %v556_v37, %v556_v37 }
 0x1fd   :  { %v559_v39 = vpack.c.bf16 %v557_v38, %v557_v38 }
 0x1ff   :  { %796 = vmatprep.mubr.bf16.mxu1 %v559_v39 }
 0x200   :  { %797 = vmatmul.mubr.bf16.vlgmr.msra.gmra.mrb[0].mxu1 %v558_v41 }
 0x2d3   :  { %v798_v21 = vpop.f32.mrb[0].mxu1 }
 0x2d4   :  { %v799_v44 = vadd.f32 %v798_v21, %v597_v42  ;;  %v800_v45 = vpop.f32.mrb[1].mxu1 }
 0x2d5   :  { %v801_v46 = vadd.f32 %v800_v45, %v601_v43  ;;  %v802_v47 = vpop.f32.mrb[2].mxu1 }
 0x2d6   :  { %805 = vst [vmem:[#allocation7] sm:$0xff] %v799_v44  ;;  %v803_v48 = vpop.f32.mrb[3].mxu1 }
 0x2d7   :  { %806 = vst [vmem:[#allocation7 + $0x8] sm:$0xff] %v801_v46 }
 0x2d8   :  { %1083 = shalt.err (!%p1080_p6)
}
 0x2d9   :  { %s1084_s12 = scalar_lea.hbm %s1292_s7, 256 }
 0x2da   :  { %p1085_p7 = scmp.ne.s32.totalorder %s1292_s7, %s1084_s12  ;;  %p1088_p8 = scmp.lt.u32.totalorder %s1084_s12, %s1292_s7 }
 0x2dc   :  { %p1090_p9 = pnand %p1088_p8, %p1085_p7 }
 0x2de   :  { %1093 = shalt.err (!%p1090_p9)
}
 0x2df   :  { %816 = dma.vmem_to_hbm [thread:$0]  %s814_s9, 256, %s1292_s7, [#allocation4]  }
 0x2e0   :  { %1098 = dma.done.wait [#allocation4], 256  }
 0x2e1   :  { %1099 = vsyncadd [#allocation4], 4294967040 }
 0x2e2   :  { %820 = vsyncpa [#allocation3], 1 }
 0x2e3   :  { %821 = vsyncpa [#allocation6], 1 }
 0x2e4   :  { %822 = vsyncpa [#allocation4], 1 }

// kernel: tpu_custom_call.1
= control target key start
LH: loop header
LB: loop body
LE: loop exit
PB: predicated region body
PF: predicated region fallthrough
CT: control target
= control target key end

     0   :  { %12 = vsyncpa [#allocation3], 0  ;;  %s1285_s0 = inlined_call_operand.vmem [shape: f32[8,1], index: 0, kind: input, shape index: {}]   ;;  %s1286_s1 = inlined_call_operand.vmem [shape: f32[1,256], index: 1, kind: input, shape index: {}]   ;;  %s1287_s2 = inlined_call_operand.vmem [shape: f32[1,256], index: 2, kind: input, shape index: {}]   ;;  %s1288_s3 = inlined_call_operand.hbm [shape: bf16[256,256], index: 3, kind: input, shape index: {}]   ;;  %s1289_s4 = inlined_call_operand.vmem [shape: f32[1,256], index: 4, kind: input, shape index: {}]   ;;  %s1290_s5 = inlined_call_operand.hbm [shape: bf16[256,256], index: 5, kind: input, shape index: {}]   ;;  %s1291_s6 = inlined_call_operand.vmem [shape: f32[1,256], index: 6, kind: input, shape index: {}]   ;;  %s1292_s7 = inlined_call_operand.hbm [shape: f32[8,256], index: 7, kind: output, shape index: {}]  }
   0x1   :  { %13 = vsyncpa [#allocation6], 0 }
   0x2   :  { %14 = vsyncpa [#allocation4], 0  ;;  %s1100_s24 = smov [#allocation2]   ;;  %s1028_s28 = scalar_lea.hbm %s1288_s3, 4096 }
   0x3   :  { %s26_s25 = sshll.u32 %s1100_s24, 4  ;;  %p1029_p0 = scmp.ne.s32.totalorder %s1288_s3, %s1028_s28  ;;  %s27_s25 = int_to_ptr.vmem [resolvable:$true] %s26_s25 }
   0x4   :  { %p1032_p1 = scmp.lt.u32.totalorder %s1028_s28, %s1288_s3 }
   0x6   :  { %p1034_p2 = pnand %p1032_p1, %p1029_p0 }
   0x8   :  { %1037 = shalt.err (!%p1034_p2)
}
   0x9   :  { %s1038_s10 = scalar_lea.vmem %s27_s25, 4096  ;;  %p1043_p4 = scmp.lt.s32.totalorder %s27_s25, %s27_s25 }
   0xa   :  { %p1039_p3 = scmp.ne.s32.totalorder %s27_s25, %s1038_s10  ;;  %p1044_p5 = scmp.lt.s32.totalorder %s1038_s10, %s1038_s10 }
   0xc   :  { %p1045_p6 = por %p1044_p5, %p1043_p4 }
   0xe   :  { %p1046_p7 = pnand %p1045_p6, %p1039_p3 }
  0x10   :  { %1049 = shalt.err (!%p1046_p7)
}
  0x11   :  { %s1101_s11 = smov 128   ;;  %s1102_s12 = smov 8  }
  0x12   :  { %32 = dma.hbm_to_vmem [thread:$0]  %s1288_s3, 4096, %s27_s25, [#allocation3], %s1101_s11, %s1101_s11, %s1102_s12  }
  0x13   :  { %s1103_s15 = smov [#allocation5]   ;;  %s1050_s19 = scalar_lea.hbm %s1290_s5, 4096 }
  0x14   :  { %s40_s16 = sshll.u32 %s1103_s15, 4  ;;  %p1051_p8 = scmp.ne.s32.totalorder %s1290_s5, %s1050_s19  ;;  %s41_s16 = int_to_ptr.vmem [resolvable:$true] %s40_s16 }
  0x15   :  { %p1054_p9 = scmp.lt.u32.totalorder %s1050_s19, %s1290_s5 }
  0x17   :  { %p1056_p10 = pnand %p1054_p9, %p1051_p8 }
  0x19   :  { %1059 = shalt.err (!%p1056_p10)
}
  0x1a   :  { %s1060_s24 = scalar_lea.vmem %s41_s16, 4096  ;;  %p1065_p12 = scmp.lt.s32.totalorder %s41_s16, %s41_s16 }
  0x1b   :  { %p1061_p11 = scmp.ne.s32.totalorder %s41_s16, %s1060_s24  ;;  %p1066_p13 = scmp.lt.s32.totalorder %s1060_s24, %s1060_s24 }
  0x1d   :  { %p1067_p0 = por %p1066_p13, %p1065_p12 }
  0x1f   :  { %p1068_p1 = pnand %p1067_p0, %p1061_p11 }
  0x21   :  { %1071 = shalt.err (!%p1068_p1)
}
  0x22   :  { %46 = dma.hbm_to_vmem [thread:$0]  %s1290_s5, 4096, %s41_s16, [#allocation6], %s1101_s11, %s1101_s11, %s1102_s12  }
  0x23   :  { %1094 = dma.done.wait [#allocation3], 4096  }
  0x24   :  { %1095 = vsyncadd [#allocation3], 4294963200 }
  0x25   :  { %1096 = dma.done.wait [#allocation6], 4096  }
  0x26   :  { %1097 = vsyncadd [#allocation6], 4294963200  ;;  %v1104_v0 = vmov 0   ;;  %v57_v1 = vld [vmem:[%s1285_s0] sm:$0xff]  ;;  %v919_v4 = vld [vmem:[#allocation2 + $0x14] ss:$8 sps:$4 sm:$0xff]   ;;  %v65_v43 = vlaneseq }
  0x27   :  { %915 = vset.pattern.permute.xlu0 %v1104_v0  ;;  %v916_v2 = vld [vmem:[#allocation2 + $0x4] ss:$8 sps:$4 sm:$0xff]   ;;  %v918_v3 = vld [vmem:[#allocation2] ss:$8 sps:$4 sm:$0xff]   ;;  %v921_v5 = vld [vmem:[#allocation2 + $0x10] ss:$8 sps:$4 sm:$0xff]  }
  0x28   :  { %61 = vperm.xlu0 %915, %v57_v1   ;;  %505 = vmatprep.subr.bf16.mxu0 %v916_v2  ;;  %v922_v6 = vld [vmem:[#allocation2 + $0x24] ss:$8 sps:$4 sm:$0xff]   ;;  %v924_v7 = vld [vmem:[#allocation2 + $0x20] ss:$8 sps:$4 sm:$0xff]   ;;  %v925_v8 = vld [vmem:[#allocation2 + $0x34] ss:$8 sps:$4 sm:$0xff]  }
  0x29   :  { %506 = vmatpush1.bf16.msra.mxu0 %v918_v3  ;;  %v927_v9 = vld [vmem:[#allocation2 + $0x30] ss:$8 sps:$4 sm:$0xff]   ;;  %v928_v10 = vld [vmem:[#allocation2 + $0x44] ss:$8 sps:$4 sm:$0xff]   ;;  %v930_v11 = vld [vmem:[#allocation2 + $0x40] ss:$8 sps:$4 sm:$0xff]  }
  0x2a   :  { %507 = vmatprep.subr.bf16.mxu0 %v919_v4  ;;  %v931_v12 = vld [vmem:[#allocation2 + $0x54] ss:$8 sps:$4 sm:$0xff]   ;;  %v933_v13 = vld [vmem:[#allocation2 + $0x50] ss:$8 sps:$4 sm:$0xff]   ;;  %v934_v14 = vld [vmem:[#allocation2 + $0x64] ss:$8 sps:$4 sm:$0xff]  }
  0x2b   :  { %v936_v15 = vld [vmem:[#allocation2 + $0x60] ss:$8 sps:$4 sm:$0xff]   ;;  %v937_v16 = vld [vmem:[#allocation2 + $0x74] ss:$8 sps:$4 sm:$0xff]   ;;  %v939_v17 = vld [vmem:[#allocation2 + $0x70] ss:$8 sps:$4 sm:$0xff]  }
  0x2c   :  { %v940_v18 = vld [vmem:[#allocation2 + $0x84] ss:$8 sps:$4 sm:$0xff]   ;;  %v942_v19 = vld [vmem:[#allocation2 + $0x80] ss:$8 sps:$4 sm:$0xff]   ;;  %v943_v20 = vld [vmem:[#allocation2 + $0x94] ss:$8 sps:$4 sm:$0xff]  }
  0x2d   :  { %508 = vmatpush1.bf16.msra.mxu0 %v921_v5  ;;  %v945_v21 = vld [vmem:[#allocation2 + $0x90] ss:$8 sps:$4 sm:$0xff]   ;;  %v946_v22 = vld [vmem:[#allocation2 + $0xa4] ss:$8 sps:$4 sm:$0xff]   ;;  %v948_v23 = vld [vmem:[#allocation2 + $0xa0] ss:$8 sps:$4 sm:$0xff]  }
  0x2e   :  { %509 = vmatprep.subr.bf16.mxu0 %v922_v6  ;;  %v949_v24 = vld [vmem:[#allocation2 + $0xb4] ss:$8 sps:$4 sm:$0xff]   ;;  %v951_v25 = vld [vmem:[#allocation2 + $0xb0] ss:$8 sps:$4 sm:$0xff]   ;;  %v952_v26 = vld [vmem:[#allocation2 + $0xc4] ss:$8 sps:$4 sm:$0xff]  }
  0x2f   :  { %v954_v27 = vld [vmem:[#allocation2 + $0xc0] ss:$8 sps:$4 sm:$0xff]   ;;  %v955_v28 = vld [vmem:[#allocation2 + $0xd4] ss:$8 sps:$4 sm:$0xff]   ;;  %v957_v29 = vld [vmem:[#allocation2 + $0xd0] ss:$8 sps:$4 sm:$0xff]  }
  0x30   :  { %v958_v30 = vld [vmem:[#allocation2 + $0xe4] ss:$8 sps:$4 sm:$0xff]   ;;  %v960_v31 = vld [vmem:[#allocation2 + $0xe0] ss:$8 sps:$4 sm:$0xff]   ;;  %v961_v32 = vld [vmem:[#allocation2 + $0xf4] ss:$8 sps:$4 sm:$0xff]  }
  0x31   :  { %510 = vmatpush1.bf16.msra.mxu0 %v924_v7  ;;  %v963_v33 = vld [vmem:[#allocation2 + $0xf0] ss:$8 sps:$4 sm:$0xff]   ;;  %v964_v34 = vld [vmem:[#allocation5 + $0x4] ss:$8 sps:$4 sm:$0xff]   ;;  %v966_v35 = vld [vmem:[#allocation5] ss:$8 sps:$4 sm:$0xff]  }
  0x32   :  { %511 = vmatprep.subr.bf16.mxu0 %v925_v8  ;;  %v967_v36 = vld [vmem:[#allocation5 + $0x14] ss:$8 sps:$4 sm:$0xff]   ;;  %764 = vmatprep.subr.bf16.mxu1 %v964_v34  ;;  %v969_v37 = vld [vmem:[#allocation5 + $0x10] ss:$8 sps:$4 sm:$0xff]   ;;  %v970_v38 = vld [vmem:[#allocation5 + $0x24] ss:$8 sps:$4 sm:$0xff]  }
  0x33   :  { %765 = vmatpush1.bf16.msra.mxu1 %v966_v35  ;;  %v972_v39 = vld [vmem:[#allocation5 + $0x20] ss:$8 sps:$4 sm:$0xff]   ;;  %v973_v40 = vld [vmem:[#allocation5 + $0x34] ss:$8 sps:$4 sm:$0xff]   ;;  %v975_v41 = vld [vmem:[#allocation5 + $0x30] ss:$8 sps:$4 sm:$0xff]  }
  0x34   :  { %766 = vmatprep.subr.bf16.mxu1 %v967_v36  ;;  %v976_v42 = vld [vmem:[#allocation5 + $0x44] ss:$8 sps:$4 sm:$0xff]   ;;  %v978_v44 = vld [vmem:[#allocation5 + $0x40] ss:$8 sps:$4 sm:$0xff]   ;;  %v979_v45 = vld [vmem:[#allocation5 + $0x54] ss:$8 sps:$4 sm:$0xff]  }
  0x35   :  { %512 = vmatpush1.bf16.msra.mxu0 %v927_v9  ;;  %v66_v46 = vshrl.u32 %v65_v43, 7  ;;  %v981_v47 = vld [vmem:[#allocation5 + $0x50] ss:$8 sps:$4 sm:$0xff]   ;;  %v982_v48 = vld [vmem:[#allocation5 + $0x64] ss:$8 sps:$4 sm:$0xff]   ;;  %s1111_s8 = smov [#allocation7]  }
  0x36   :  { %513 = vmatprep.subr.bf16.mxu0 %v928_v10  ;;  %v58_v51 = vld [vmem:[%s1286_s1] sm:$0x3]  ;;  %v1110_v36 = vmov 1326507024   ;;  %s813_s9 = sshll.u32 %s1111_s8, 4  ;;  %s814_s9 = int_to_ptr.vmem [resolvable:$true] %s813_s9 }
  0x37   :  { %767 = vmatpush1.bf16.msra.mxu1 %v969_v37  ;;  %v1179_v49 = vsub.s32 0, %v66_v46  ;;  %v1181_v50 = vsub.s32 1, %v66_v46  ;;  %v984_v52 = vld [vmem:[#allocation5 + $0x60] ss:$8 sps:$4 sm:$0xff]   ;;  %s1072_s10 = scalar_lea.vmem %s814_s9, 256  ;;  %p1077_p3 = scmp.lt.s32.totalorder %s814_s9, %s814_s9 }
  0x38   :  { %768 = vmatprep.subr.bf16.mxu1 %v970_v38  ;;  %v77_v53 = vld [vmem:[%s1287_s2] sm:$0x3]  ;;  %p1073_p2 = scmp.ne.s32.totalorder %s814_s9, %s1072_s10  ;;  %p1078_p4 = scmp.lt.s32.totalorder %s1072_s10, %s1072_s10 }
  0x39   :  { %514 = vmatpush1.bf16.msra.mxu0 %v930_v11  ;;  %v68_v54 = vrot.slane %v58_v51, %v1179_v49  ;;  %v72_v55 = vrot.slane %v58_v51, %v1181_v50  ;;  %v82_v56 = vrot.slane %v77_v53, %v1179_v49  ;;  %v86_v57 = vrot.slane %v77_v53, %v1181_v50 }
  0x3a   :  { %515 = vmatprep.subr.bf16.mxu0 %v931_v12  ;;  %p1079_p5 = por %p1078_p4, %p1077_p3 }
  0x3b   :  { %769 = vmatpush1.bf16.msra.mxu1 %v972_v39 }
  0x3c   :  { %770 = vmatprep.subr.bf16.mxu1 %v973_v40  ;;  %p1080_p6 = pnand %p1079_p5, %p1073_p2 }
  0x3d   :  { %516 = vmatpush1.bf16.msra.mxu0 %v933_v13 }
  0x3e   :  { %517 = vmatprep.subr.bf16.mxu0 %v934_v14 }
  0x3f   :  { %771 = vmatpush1.bf16.msra.mxu1 %v975_v41 }
  0x40   :  { %772 = vmatprep.subr.bf16.mxu1 %v976_v42 }
  0x41   :  { %518 = vmatpush1.bf16.msra.mxu0 %v936_v15 }
  0x42   :  { %519 = vmatprep.subr.bf16.mxu0 %v937_v16 }
  0x43   :  { %773 = vmatpush1.bf16.msra.mxu1 %v978_v44 }
  0x44   :  { %774 = vmatprep.subr.bf16.mxu1 %v979_v45 }
  0x45   :  { %520 = vmatpush1.bf16.msra.mxu0 %v939_v17 }
  0x46   :  { %521 = vmatprep.subr.bf16.mxu0 %v940_v18 }
  0x47   :  { %775 = vmatpush1.bf16.msra.mxu1 %v981_v47 }
  0x48   :  { %776 = vmatprep.subr.bf16.mxu1 %v982_v48 }
  0x49   :  { %522 = vmatpush1.bf16.msra.mxu0 %v942_v19  ;;  %v1105_v19 = vmov 683565275  }
  0x4a   :  { %523 = vmatprep.subr.bf16.mxu0 %v943_v20 }
  0x4b   :  { %777 = vmatpush1.bf16.msra.mxu1 %v984_v52 }
  0x4d   :  { %524 = vmatpush1.bf16.msra.mxu0 %v945_v21 }
  0x4e   :  { %525 = vmatprep.subr.bf16.mxu0 %v946_v22 }
  0x51   :  { %526 = vmatpush1.bf16.msra.mxu0 %v948_v23  ;;  %v1106_v23 = vmov 2475754826  }
  0x52   :  { %527 = vmatprep.subr.bf16.mxu0 %v949_v24 }
  0x55   :  { %528 = vmatpush1.bf16.msra.mxu0 %v951_v25  ;;  %v1107_v25 = vmov 2131351028  }
  0x56   :  { %529 = vmatprep.subr.bf16.mxu0 %v952_v26 }
  0x59   :  { %530 = vmatpush1.bf16.msra.mxu0 %v954_v27  ;;  %v1108_v27 = vmov 2102212464  }
  0x5a   :  { %531 = vmatprep.subr.bf16.mxu0 %v955_v28 }
  0x5d   :  { %532 = vmatpush1.bf16.msra.mxu0 %v957_v29  ;;  %v1109_v29 = vmov 920167782  }
  0x5e   :  { %533 = vmatprep.subr.bf16.mxu0 %v958_v30 }
  0x61   :  { %534 = vmatpush1.bf16.msra.mxu0 %v960_v31 }
  0x62   :  { %535 = vmatprep.subr.bf16.mxu0 %v961_v32 }
  0x65   :  { %536 = vmatpush1.bf16.msra.mxu0 %v963_v33 }
  0xa7   :  { %v62_v58 = vpop.permute.xlu0 %61 }
  0xa8   :  { %v75_v59 = vmul.f32 %v68_v54, %v62_v58  ;;  %v76_v60 = vmul.f32 %v72_v55, %v62_v58 }
  0xaa   :  { %v1193_v61 = vadd.f32 %v82_v56, %v75_v59  ;;  %v1195_v62 = vadd.f32 %v86_v57, %v76_v60 }
  0xac   :  { %v91_v63 = vand.u32 2147483647, %v1193_v61  ;;  %v94_v0 = vand.u32 2139095040, %v1193_v61  ;;  %v198_v1 = vand.u32 2139095040, %v1195_v62  ;;  %v195_v5 = vand.u32 2147483647, %v1195_v62 }
  0xad   :  { %vm93_vm14 = vcmp.lt.s32.totalorder %v1193_v61, 0 }
  0xae   :  { %v95_v2 = vshrl.u32 %v94_v0, 23  ;;  %v199_v3 = vshrl.u32 %v198_v1, 23  ;;  %v98_v4 = vand.u32 8388607, %v91_v63  ;;  %v1205_v11 = vand.u32 8388607, %v195_v5 }
  0xaf   :  { %vm1248_vm15 = vcmp.le.f32.partialorder %v91_v63, 0.7853982 }
  0xb0   :  { %v823_v6 = vadd.s32 4294967169, %v95_v2  ;;  %v827_v7 = vadd.s32 4294967169, %v199_v3  ;;  %v99_v10 = vor.u32 8388608, %v98_v4  ;;  %v203_v17 = vor.u32 8388608, %v1205_v11 }
  0xb2   :  { %v101_v8 = vadd.s32 1, %v823_v6  ;;  %v205_v9 = vadd.s32 1, %v827_v7  ;;  %v1207_v16 = vshll.u32 %v99_v10, 8 }
  0xb4   :  { %vm102_vm0 = vcmp.gt.s32.totalorder %v101_v8, 0  ;;  %vm206_vm1 = vcmp.gt.s32.totalorder %v205_v9, 0 }
  0xb5   :  { %v103_v12 = vsel %vm102_vm0, %v101_v8, 0  ;;  %v207_v13 = vsel %vm206_vm1, %v205_v9, 0  ;;  %vm197_vm0 = vcmp.lt.s32.totalorder %v1195_v62, 0  ;;  %vm196_vm1 = vcmp.le.f32.partialorder %v195_v5, 0.7853982 }
  0xb6   :  { %v104_v14 = vshrl.u32 %v103_v12, 5  ;;  %v105_v15 = vand.u32 31, %v103_v12  ;;  %v1210_v21 = vshrl.u32 %v207_v13, 5  ;;  %v209_v22 = vand.u32 31, %v207_v13 }
  0xb7   :  { %v243_v13 = vshll.u32 %v203_v17, 8 }
  0xb8   :  { %v106_v18 = vsub.s32 32, %v105_v15  ;;  %v108_v20 = vshll.u32 %v1105_v19, %v105_v15  ;;  %v111_v24 = vshll.u32 %v1106_v23, %v105_v15  ;;  %v114_v26 = vshll.u32 %v1107_v25, %v105_v15 }
  0xb9   :  { %v117_v28 = vshll.u32 %v1108_v27, %v105_v15  ;;  %v120_v30 = vshll.u32 %v1109_v29, %v105_v15  ;;  %vm123_vm2 = vcmp.lt.s32.totalorder %v104_v14, 1  ;;  %vm124_vm3 = vcmp.lt.s32.totalorder %v104_v14, 2 }
  0xba   :  { %v109_v31 = vshrl.u32 %v1106_v23, %v106_v18  ;;  %v112_v32 = vshrl.u32 %v1107_v25, %v106_v18  ;;  %v115_v33 = vshrl.u32 %v1108_v27, %v106_v18  ;;  %v107_v34 = vshrl.u32 %v1105_v19, %v106_v18 }
  0xbb   :  { %v118_v35 = vshrl.u32 %v1109_v29, %v106_v18  ;;  %v121_v37 = vshrl.u32 %v1110_v36, %v106_v18  ;;  %v210_v41 = vsub.s32 32, %v209_v22  ;;  %vm125_vm4 = vcmp.lt.s32.totalorder %v104_v14, 3 }
  0xbc   :  { %v110_v38 = vor.u32 %v109_v31, %v108_v20  ;;  %v113_v39 = vor.u32 %v112_v32, %v111_v24  ;;  %v116_v40 = vor.u32 %v115_v33, %v114_v26  ;;  %vm126_vm5 = vcmp.lt.s32.totalorder %v104_v14, 4 }
  0xbd   :  { %v119_v42 = vor.u32 %v118_v35, %v117_v28  ;;  %v122_v43 = vor.u32 %v121_v37, %v120_v30  ;;  %v212_v53 = vshll.u32 %v1105_v19, %v209_v22  ;;  %v213_v56 = vshrl.u32 %v1106_v23, %v210_v41 }
  0xbe   :  { %v127_v44 = vsel %vm123_vm2, %v107_v34, %v110_v38  ;;  %v128_v45 = vsel %vm126_vm5, %v116_v40, 2102212464  ;;  %v131_v46 = vsel %vm123_vm2, %v110_v38, %v113_v39  ;;  %v135_v47 = vsel %vm123_vm2, %v113_v39, %v116_v40 }
  0xbf   :  { %v129_v48 = vsel %vm125_vm4, %v113_v39, %v128_v45  ;;  %v132_v51 = vsel %vm126_vm5, %v119_v42, 920167782  ;;  %v136_v52 = vsel %vm126_vm5, %v122_v43, 1326507024  ;;  %v215_v57 = vshll.u32 %v1106_v23, %v209_v22 }
  0xc0   :  { %v133_v54 = vsel %vm125_vm4, %v116_v40, %v132_v51  ;;  %v137_v55 = vsel %vm125_vm4, %v119_v42, %v136_v52  ;;  %v130_v58 = vsel %vm124_vm3, %v127_v44, %v129_v48  ;;  %v216_v0 = vshrl.u32 %v1107_v25, %v210_v41 }
  0xc1   :  { %v134_v59 = vsel %vm124_vm3, %v131_v46, %v133_v54  ;;  %v138_v60 = vsel %vm124_vm3, %v135_v47, %v137_v55  ;;  %v214_v6 = vor.u32 %v213_v56, %v212_v53  ;;  %v218_v8 = vshll.u32 %v1107_v25, %v209_v22 }
  0xc2   :  { %v1219_v1 = vmul.u32.u64.low %v1207_v16, %v138_v60  ;;  %v1220_v2 = vmul.u32.u64.high %v1207_v16, %v138_v60, %v1219_v1  ;;  %v1223_v3 = vmul.u32.u64.low %v1207_v16, %v134_v59  ;;  %v1224_v4 = vmul.u32.u64.high %v1207_v16, %v134_v59, %v1223_v3 }
  0xc3   :  { %v217_v7 = vor.u32 %v216_v0, %v215_v57  ;;  %v219_v9 = vshrl.u32 %v1108_v27, %v210_v41  ;;  %v221_v10 = vshll.u32 %v1108_v27, %v209_v22  ;;  %v222_v11 = vshrl.u32 %v1109_v29, %v210_v41 }
  0xc4   :  { %v225_v12 = vshrl.u32 %v1110_v36, %v210_v41  ;;  %v146_v14 = vmul.u32 %v1207_v16, %v130_v58  ;;  %v211_v15 = vshrl.u32 %v1105_v19, %v210_v41  ;;  %v224_v20 = vshll.u32 %v1109_v29, %v209_v22 }
  0xc5   :  { %v220_v18 = vor.u32 %v219_v9, %v218_v8  ;;  %vm148_vm6 = vc.u32 %v1220_v2, %v1223_v3  ;;  %v149_v23 = vadd.s32 1, %v1224_v4  ;;  %v223_v24 = vor.u32 %v222_v11, %v221_v10 }
  0xc6   :  { %vm227_vm7 = vcmp.lt.s32.totalorder %v1210_v21, 1  ;;  %v226_v26 = vor.u32 %v225_v12, %v224_v20  ;;  %vm229_vm8 = vcmp.lt.s32.totalorder %v1210_v21, 3  ;;  %vm230_vm9 = vcmp.lt.s32.totalorder %v1210_v21, 4 }
  0xc7   :  { %v235_v25 = vsel %vm227_vm7, %v214_v6, %v217_v7  ;;  %v150_v17 = vsel %vm148_vm6, %v149_v23, %v1224_v4  ;;  %v232_v27 = vsel %vm230_vm9, %v220_v18, 2102212464  ;;  %v236_v16 = vsel %vm230_vm9, %v223_v24, 920167782 }
  0xc8   :  { %v239_v19 = vsel %vm227_vm7, %v217_v7, %v220_v18  ;;  %v151_v28 = vadd.s32 %v150_v17, %v146_v14  ;;  %vm228_vm10 = vcmp.lt.s32.totalorder %v1210_v21, 2  ;;  %v237_v22 = vsel %vm229_vm8, %v220_v18, %v236_v16 }
  0xc9   :  { %v240_v29 = vsel %vm230_vm9, %v226_v26, 1326507024  ;;  %v231_v30 = vsel %vm227_vm7, %v211_v15, %v214_v6  ;;  %v233_v31 = vsel %vm229_vm8, %v217_v7, %v232_v27  ;;  %v238_v32 = vsel %vm228_vm10, %v235_v25, %v237_v22 }
  0xca   :  { %v241_v33 = vsel %vm229_vm8, %v223_v24, %v240_v29  ;;  %v152_v34 = vadd.s32 536870912, %v151_v28  ;;  %v1234_v36 = vmul.u32.u64.low %v243_v13, %v238_v32  ;;  %v1235_v37 = vmul.u32.u64.high %v243_v13, %v238_v32, %v1234_v36 }
  0xcb   :  { %v242_v35 = vsel %vm228_vm10, %v239_v19, %v241_v33  ;;  %v234_v41 = vsel %vm228_vm10, %v231_v30, %v233_v31  ;;  %v147_v59 = vadd.s32 %v1223_v3, %v1220_v2  ;;  %vm183_vm6 = vweird.f32 %v1193_v61 }
  0xcc   :  { %v1237_v38 = vmul.u32.u64.low %v243_v13, %v242_v35  ;;  %v1238_v39 = vmul.u32.u64.high %v243_v13, %v242_v35, %v1237_v38  ;;  %v153_v40 = vshrl.u32 %v152_v34, 30  ;;  %v253_v43 = vadd.s32 1, %v1235_v37 }
  0xcd   :  { %v250_v21 = vmul.u32 %v243_v13, %v234_v41  ;;  %vm287_vm9 = vweird.f32 %v1195_v62 }
  0xce   :  { %v154_v42 = vshll.u32 %v153_v40, 30  ;;  %vm252_vm11 = vc.u32 %v1238_v39, %v1234_v36  ;;  %v251_v18 = vadd.s32 %v1234_v36, %v1238_v39  ;;  %v177_v16 = vsub.s32 4, %v153_v40 }
  0xcf   :  { %v254_v45 = vsel %vm252_vm11, %v253_v43, %v1235_v37 }
  0xd0   :  { %v155_v44 = vsub.s32 %v151_v28, %v154_v42  ;;  %v255_v46 = vadd.s32 %v254_v45, %v250_v21  ;;  %v178_v32 = vsel %vm93_vm14, %v177_v16, %v153_v40 }
  0xd1   :  { %v180_v35 = vsel %vm1248_vm15, 0, %v178_v32 }
  0xd2   :  { %v157_v47 = vsub.s32 0, %v155_v44  ;;  %v256_v48 = vadd.s32 536870912, %v255_v46  ;;  %v184_v38 = vadd.s32 3, %v180_v35 }
  0xd4   :  { %v824_v51 = vmin.u32 %v157_v47, %v155_v44  ;;  %v257_v52 = vshrl.u32 %v256_v48, 30  ;;  %v185_v43 = vand.u32 3, %v184_v38 }
  0xd6   :  { %v159_v53 = vclz %v824_v51  ;;  %v258_v54 = vshll.u32 %v257_v52, 30  ;;  %v281_v34 = vsub.s32 4, %v257_v52  ;;  %vm187_vm2 = vcmp.eq.s32.totalorder %v185_v43, 0 }
  0xd7   :  { %vm190_vm3 = vcmp.eq.s32.totalorder %v185_v43, 2  ;;  %vm186_vm4 = vcmp.lt.s32.totalorder %v185_v43, 2 }
  0xd8   :  { %v825_v55 = vadd.s32 4294967294, %v159_v53  ;;  %v259_v56 = vsub.s32 %v255_v46, %v258_v54  ;;  %v282_v37 = vsel %vm197_vm0, %v281_v34, %v257_v52 }
  0xd9   :  { %v284_v40 = vsel %vm196_vm1, 0, %v282_v37 }
  0xda   :  { %vm826_vm12 = vcmp.lt.s32.totalorder %v825_v55, 0  ;;  %v261_v58 = vsub.s32 0, %v259_v56  ;;  %v288_v45 = vadd.s32 3, %v284_v40  ;;  %v592_v40 = vld [vmem:[%s1291_s6] sm:$0x3] }
  0xdb   :  { %v162_v57 = vsel %vm826_vm12, 0, %v825_v55  ;;  %v601_v43 = vrot.slane %v592_v40, %v1181_v50 }
  0xdc   :  { %v163_v60 = vsub.s32 32, %v162_v57  ;;  %v167_v0 = vsub.s32 4294967266, %v162_v57  ;;  %v828_v1 = vmin.u32 %v261_v58, %v259_v56  ;;  %v164_v4 = vshll.u32 %v155_v44, %v162_v57 }
  0xdd   :  { %v289_v48 = vand.u32 3, %v288_v45 }
  0xde   :  { %v165_v6 = vshrl.u32 %v147_v59, %v163_v60  ;;  %v168_v7 = vadd.s32 127, %v167_v0  ;;  %v263_v8 = vclz %v828_v1  ;;  %v985_v1 = vld [vmem:[#allocation5 + $0x74] ss:$8 sps:$4 sm:$0xff]  }
  0xdf   :  { %vm294_vm5 = vcmp.eq.s32.totalorder %v289_v48, 2  ;;  %vm291_vm7 = vcmp.eq.s32.totalorder %v289_v48, 0  ;;  %vm290_vm8 = vcmp.lt.s32.totalorder %v289_v48, 2  ;;  %778 = vmatprep.subr.bf16.mxu1 %v985_v1 }
  0xe0   :  { %v166_v9 = vor.u32 %v165_v6, %v164_v4  ;;  %v169_v10 = vshll.u32 %v168_v7, 23  ;;  %v829_v11 = vadd.s32 4294967294, %v263_v8  ;;  %v987_v4 = vld [vmem:[#allocation5 + $0x70] ss:$8 sps:$4 sm:$0xff]   ;;  %v988_v6 = vld [vmem:[#allocation5 + $0x84] ss:$8 sps:$4 sm:$0xff]  }
  0xe1   :  { %779 = vmatpush1.bf16.msra.mxu1 %v987_v4  ;;  %v990_v7 = vld [vmem:[#allocation5 + $0x80] ss:$8 sps:$4 sm:$0xff]   ;;  %v993_v8 = vld [vmem:[#allocation5 + $0x90] ss:$8 sps:$4 sm:$0xff]  }
  0xe2   :  { %v170_v12 = vor.u32 4788187, %v169_v10  ;;  %vm830_vm13 = vcmp.lt.s32.totalorder %v829_v11, 0  ;;  %v173_v14 = vcvt.s32.f32 %v166_v9  ;;  %780 = vmatprep.subr.bf16.mxu1 %v988_v6  ;;  %v994_v9 = vld [vmem:[#allocation5 + $0xa4] ss:$8 sps:$4 sm:$0xff]  }
  0xe3   :  { %v266_v15 = vsel %vm830_vm13, 0, %v829_v11  ;;  %v997_v10 = vld [vmem:[#allocation5 + $0xb4] ss:$8 sps:$4 sm:$0xff]   ;;  %v999_v11 = vld [vmem:[#allocation5 + $0xb0] ss:$8 sps:$4 sm:$0xff]  }
  0xe4   :  { %v171_v13 = vand.u32 2147483647, %v170_v12  ;;  %v267_v20 = vsub.s32 32, %v266_v15  ;;  %v271_v23 = vsub.s32 4294967266, %v266_v15  ;;  %v268_v3 = vshll.u32 %v259_v56, %v266_v15  ;;  %v1000_v12 = vld [vmem:[#allocation5 + $0xc4] ss:$8 sps:$4 sm:$0xff]  }
  0xe5   :  { %781 = vmatpush1.bf16.msra.mxu1 %v990_v7  ;;  %v1005_v15 = vld [vmem:[#allocation5 + $0xd0] ss:$8 sps:$4 sm:$0xff]  }
  0xe6   :  { %v174_v2 = vmul.f32 %v173_v14, %v171_v13  ;;  %v269_v24 = vshrl.u32 %v251_v18, %v267_v20  ;;  %v272_v26 = vadd.s32 127, %v271_v23  ;;  %v1002_v13 = vld [vmem:[#allocation5 + $0xc0] ss:$8 sps:$4 sm:$0xff]   ;;  %v1003_v14 = vld [vmem:[#allocation5 + $0xd4] ss:$8 sps:$4 sm:$0xff]  }
  0xe7   :  { %v1006_v18 = vld [vmem:[#allocation5 + $0xe4] ss:$8 sps:$4 sm:$0xff]   ;;  %v1008_v20 = vld [vmem:[#allocation5 + $0xe0] ss:$8 sps:$4 sm:$0xff]   ;;  %v1009_v23 = vld [vmem:[#allocation5 + $0xf4] ss:$8 sps:$4 sm:$0xff]  }
  0xe8   :  { %v175_v25 = vxor.u32 2147483648, %v174_v2  ;;  %v270_v17 = vor.u32 %v269_v24, %v268_v3  ;;  %v273_v27 = vshll.u32 %v272_v26, 23  ;;  %v333_v3 = vld [vmem:[%s1289_s4] sm:$0x3] }
  0xe9   :  { %v338_v24 = vrot.slane %v333_v3, %v1179_v49  ;;  %v342_v26 = vrot.slane %v333_v3, %v1181_v50 }
  0xea   :  { %v176_v19 = vsel %vm93_vm14, %v175_v25, %v174_v2  ;;  %v274_v22 = vor.u32 4788187, %v273_v27  ;;  %v277_v31 = vcvt.s32.f32 %v270_v17  ;;  %v1011_v2 = vld [vmem:[#allocation5 + $0xf0] ss:$8 sps:$4 sm:$0xff]  }
  0xeb   :  { %v179_v29 = vsel %vm1248_vm15, %v1193_v61, %v176_v19  ;;  %v991_v61 = vld [vmem:[#allocation5 + $0x94] ss:$8 sps:$4 sm:$0xff]  }
  0xec   :  { %1012 = vcosq.f32 %v179_v29  ;;  %v275_v30 = vand.u32 2147483647, %v274_v22  ;;  %782 = vmatprep.subr.bf16.mxu1 %v991_v61 }
  0xed   :  { %1014 = vsinq.f32 %v179_v29  ;;  %783 = vmatpush1.bf16.msra.mxu1 %v993_v8 }
  0xee   :  { %v278_v33 = vmul.f32 %v277_v31, %v275_v30  ;;  %784 = vmatprep.subr.bf16.mxu1 %v994_v9 }
  0xf0   :  { %v279_v36 = vxor.u32 2147483648, %v278_v33 }
  0xf2   :  { %v280_v63 = vsel %vm197_vm0, %v279_v36, %v278_v33 }
  0xf3   :  { %v283_v39 = vsel %vm196_vm1, %v1195_v62, %v280_v63  ;;  %v996_v62 = vld [vmem:[#allocation5 + $0xa0] ss:$8 sps:$4 sm:$0xff]  }
  0xf4   :  { %1016 = vcosq.f32 %v283_v39  ;;  %785 = vmatpush1.bf16.msra.mxu1 %v996_v62 }
  0xf5   :  { %1018 = vsinq.f32 %v283_v39  ;;  %786 = vmatprep.subr.bf16.mxu1 %v997_v10 }
  0xf6   :  { %v1013_v41 = vpop.eup %1012 }
  0xf7   :  { %v1015_v42 = vpop.eup %1014  ;;  %v191_v44 = vxor.u32 2147483648, %v1013_v41 }
  0xf8   :  { %v188_v21 = vxor.u32 2147483648, %v1015_v42  ;;  %787 = vmatpush1.bf16.msra.mxu1 %v999_v11 }
  0xf9   :  { %v192_v47 = vsel %vm190_vm3, %v191_v44, %v1015_v42  ;;  %788 = vmatprep.subr.bf16.mxu1 %v1000_v12  ;;  %v597_v42 = vrot.slane %v592_v40, %v1179_v49 }
  0xfa   :  { %v189_v46 = vsel %vm187_vm2, %v1013_v41, %v188_v21 }
  0xfb   :  { %v193_v51 = vsel %vm186_vm4, %v189_v46, %v192_v47 }
  0xfc   :  { %v194_v56 = vsel %vm183_vm6, nan, %v193_v51  ;;  %789 = vmatpush1.bf16.msra.mxu1 %v1002_v13 }
  0xfd   :  { %v299_v60 = vpack.c.bf16 %v194_v56, %v194_v56  ;;  %790 = vmatprep.subr.bf16.mxu1 %v1003_v14 }
  0xfe   :  { %v1017_v5 = vpop.eup %1016 }
  0xff   :  { %v1019_v52 = vpop.eup %1018  ;;  %v295_v53 = vxor.u32 2147483648, %v1017_v5 }
 0x100   :  { %v292_v54 = vxor.u32 2147483648, %v1019_v52  ;;  %791 = vmatpush1.bf16.msra.mxu1 %v1005_v15 }
 0x101   :  { %v296_v55 = vsel %vm294_vm5, %v295_v53, %v1019_v52  ;;  %792 = vmatprep.subr.bf16.mxu1 %v1006_v18 }
 0x102   :  { %v293_v57 = vsel %vm291_vm7, %v1017_v5, %v292_v54 }
 0x103   :  { %v297_v58 = vsel %vm290_vm8, %v293_v57, %v296_v55 }
 0x104   :  { %v298_v59 = vsel %vm287_vm9, nan, %v297_v58  ;;  %793 = vmatpush1.bf16.msra.mxu1 %v1008_v20 }
 0x105   :  { %v300_v0 = vpack.c.bf16 %v298_v59, %v298_v59  ;;  %794 = vmatprep.subr.bf16.mxu1 %v1009_v23 }
 0x107   :  { %537 = vmatprep.mubr.bf16.mxu0 %v300_v0 }
 0x108   :  { %538 = vmatmul.mubr.bf16.vlgmr.msra.gmra.mrb[0].mxu0 %v299_v60  ;;  %795 = vmatpush1.bf16.msra.mxu1 %v1011_v2 }
 0x1db   :  { %v539_v25 = vpop.f32.mrb[0].mxu0 }
 0x1dc   :  { %v540_v17 = vadd.f32 %v539_v25, %v338_v24  ;;  %v541_v27 = vpop.f32.mrb[1].mxu0 }
 0x1dd   :  { %v542_v16 = vadd.f32 %v541_v27, %v342_v26  ;;  %v543_v19 = vpop.f32.mrb[2].mxu0 }
 0x1de   :  { %v546_v28 = vsub.f32 0.0, %v540_v17  ;;  %v544_v22 = vpop.f32.mrb[3].mxu0 }
 0x1df   :  { %v547_v29 = vsub.f32 0.0, %v542_v16 }
 0x1e0   :  { %v548_v30 = vmul.f32 1.442695, %v546_v28 }
 0x1e1   :  { %v550_v31 = vmul.f32 1.442695, %v547_v29 }
 0x1e2   :  { %1020 = vpow2.f32 %v548_v30 }
 0x1e3   :  { %1022 = vpow2.f32 %v550_v31 }
 0x1ec   :  { %v1021_v32 = vpop.eup %1020 }
 0x1ed   :  { %v1023_v33 = vpop.eup %1022  ;;  %v552_v34 = vadd.f32 1.0, %v1021_v32 }
 0x1ee   :  { %v553_v35 = vadd.f32 1.0, %v1023_v33 }
 0x1ef   :  { %1024 = vrcp.f32 %v552_v34 }
 0x1f0   :  { %1026 = vrcp.f32 %v553_v35 }
 0x1f9   :  { %v1025_v36 = vpop.eup %1024 }
 0x1fa   :  { %v1027_v63 = vpop.eup %1026  ;;  %v556_v37 = vmul.f32 %v1025_v36, %v540_v17 }
 0x1fb   :  { %v557_v38 = vmul.f32 %v1027_v63, %v542_v16 }
 0x1fc   :  { %v558_v41 = vpack.c.bf16 %v556_v37, %v556_v37 }
 0x1fd   :  { %v559_v39 = vpack.c.bf16 %v557_v38, %v557_v38 }
 0x1ff   :  { %796 = vmatprep.mubr.bf16.mxu1 %v559_v39 }
 0x200   :  { %797 = vmatmul.mubr.bf16.vlgmr.msra.gmra.mrb[0].mxu1 %v558_v41 }
 0x2d3   :  { %v798_v21 = vpop.f32.mrb[0].mxu1 }
 0x2d4   :  { %v799_v44 = vadd.f32 %v798_v21, %v597_v42  ;;  %v800_v45 = vpop.f32.mrb[1].mxu1 }
 0x2d5   :  { %v801_v46 = vadd.f32 %v800_v45, %v601_v43  ;;  %v802_v47 = vpop.f32.mrb[2].mxu1 }
 0x2d6   :  { %805 = vst [vmem:[#allocation7] sm:$0xff] %v799_v44  ;;  %v803_v48 = vpop.f32.mrb[3].mxu1 }
 0x2d7   :  { %806 = vst [vmem:[#allocation7 + $0x8] sm:$0xff] %v801_v46 }
 0x2d8   :  { %1083 = shalt.err (!%p1080_p6)
}
 0x2d9   :  { %s1084_s12 = scalar_lea.hbm %s1292_s7, 256 }
 0x2da   :  { %p1085_p7 = scmp.ne.s32.totalorder %s1292_s7, %s1084_s12  ;;  %p1088_p8 = scmp.lt.u32.totalorder %s1084_s12, %s1292_s7 }
 0x2dc   :  { %p1090_p9 = pnand %p1088_p8, %p1085_p7 }
 0x2de   :  { %1093 = shalt.err (!%p1090_p9)
}
 0x2df   :  { %816 = dma.vmem_to_hbm [thread:$0]  %s814_s9, 256, %s1292_s7, [#allocation4]  }
 0x2e0   :  { %1098 = dma.done.wait [#allocation4], 256  }
 0x2e1   :  { %1099 = vsyncadd [#allocation4], 4294967040 }
 0x2e2   :  { %820 = vsyncpa [#allocation3], 1 }
 0x2e3   :  { %821 = vsyncpa [#allocation6], 1 }
 0x2e4   :  { %822 = vsyncpa [#allocation4], 1 }

</bundles_post_ra>
